<compile_context>
chip_gen: v7x
topology: tpu7x:2x2x1
jax: 0.10.0
libtpu: 0.0.40
codegen_flags: <defaults>
</compile_context>

<pallas_src>
from functools import partial

import jax
import jax.numpy as jnp
from jax.experimental import pallas as pl
from jax.experimental.pallas import tpu as pltpu


# ----------------------------------------------------------------------------
# Helpers (f32 math)
# ----------------------------------------------------------------------------
def _layer_norm(x, w, b, eps=1e-5):
    # x: (T, C) f32, w/b: (1, C) f32.  eps matches nn.LayerNorm default.
    mean = jnp.mean(x, axis=-1, keepdims=True)
    xc = x - mean
    var = jnp.mean(xc * xc, axis=-1, keepdims=True)
    inv = jax.lax.rsqrt(var + eps)
    return xc * inv * w + b


def _gelu_exact(x):
    # torch nn.GELU default: exact erf formulation.
    return 0.5 * x * (1.0 + jax.lax.erf(x * (2.0 ** -0.5)))


def _tpu_vmem_capacity_bytes(default=128 * 1024 * 1024):
    """Best-effort query of per-core VMEM capacity (falls back to 128 MiB)."""
    try:
        info = pltpu.get_tpu_info()
    except Exception:
        return default
    for name in ("vmem_capacity_bytes", "vmem_size_bytes", "vmem_bytes"):
        v = getattr(info, name, None)
        try:
            if v is not None and int(v) > 0:
                return int(v)
        except (TypeError, ValueError):
            continue
    return default


# ----------------------------------------------------------------------------
# One-time parameter preprocessing (hoisted out of the per-call path).
# ----------------------------------------------------------------------------
def prepare_params(params, *, num_heads):
    """Fold 1/sqrt(hd) into Q weight columns, cast big weights to bf16,
    reshape wproj to head-major (H, hd, C).  Call once, reuse every step."""
    C = params["wqkv"].shape[0]
    H = num_heads
    assert C % H == 0
    hd = C // H
    scale = hd ** (-0.5)
    bf16 = jnp.bfloat16
    f32 = jnp.float32

    wqkv = params["wqkv"]
    # Fold the attention scale into Q columns BEFORE the bf16 cast.
    wqkv = jnp.concatenate([wqkv[:, :C] * scale, wqkv[:, C:]], axis=1).astype(bf16)

    return {
        "ln1_w": params["ln1_w"].reshape(1, C).astype(f32),
        "ln1_b": params["ln1_b"].reshape(1, C).astype(f32),
        "wqkv": wqkv,                                             # (C, 3C) bf16
        "wprojr": params["wproj"].reshape(H, hd, C).astype(bf16),  # (H, hd, C)
        "bproj": params["bproj"].reshape(1, C).astype(f32),
        "ln2_w": params["ln2_w"].reshape(1, C).astype(f32),
        "ln2_b": params["ln2_b"].reshape(1, C).astype(f32),
        "w1": params["w1"].astype(bf16),                           # (C, Hm)
        "b1": params["b1"].reshape(1, -1).astype(f32),
        "w2": params["w2"].astype(bf16),                           # (Hm, C)
        "b2": params["b2"].reshape(1, C).astype(f32),
    }


# ----------------------------------------------------------------------------
# Stage 1: LN1 + QKV projection, token-tiled.  Writes q/k/v directly in
# head-major (B, H, N, hd) bf16 layout (no XLA transpose between stages).
# ----------------------------------------------------------------------------
def _qkv_kernel(x_ref, ln1_w_ref, ln1_b_ref, wqkv_ref, q_ref, k_ref, v_ref):
    # x_ref: (1, TN, C) f32 ; wqkv_ref: (C, 3C) bf16 (Q columns pre-scaled)
    # q/k/v_ref: (1, H, TN, hd) bf16
    H = q_ref.shape[1]
    hd = q_ref.shape[3]
    C = x_ref.shape[2]

    x = x_ref[0].astype(jnp.float32)
    xn = _layer_norm(x, ln1_w_ref[...], ln1_b_ref[...])
    qkv = jnp.dot(xn.astype(jnp.bfloat16), wqkv_ref[...],
                  preferred_element_type=jnp.float32)        # (TN, 3C) f32 acc
    qkv = qkv.astype(jnp.bfloat16)

    # Static per-head lane slices -> head-major stores (layout plumbing done
    # in-kernel instead of an extra HBM round trip through XLA).
    for h in range(H):
        q_ref[0, h] = qkv[:, h * hd:(h + 1) * hd]
        k_ref[0, h] = qkv[:, C + h * hd:C + (h + 1) * hd]
        v_ref[0, h] = qkv[:, 2 * C + h * hd:2 * C + (h + 1) * hd]


# ----------------------------------------------------------------------------
# Stage 2: attention (head-batched, key-chunked online softmax) + fused output
# projection + residual + LN2 + MLP + residual, tiled over query rows; K/V for
# the full sequence are VMEM-resident per batch element.
# ----------------------------------------------------------------------------
def _attn_mlp_kernel(
    x_ref,        # (1, TN, C)     f32
    q_ref,        # (1, H, TN, hd) bf16  (already scaled by 1/sqrt(hd))
    k_ref,        # (1, H, N,  hd) bf16
    v_ref,        # (1, H, N,  hd) bf16
    wprojr_ref,   # (H, hd, C)     bf16
    bproj_ref,    # (1, C)         f32
    ln2_w_ref,    # (1, C)         f32
    ln2_b_ref,    # (1, C)         f32
    w1_ref,       # (C, Hm)        bf16
    b1_ref,       # (1, Hm)        f32
    w2_ref,       # (Hm, C)        bf16
    b2_ref,       # (1, C)         f32
    o_ref,        # (1, TN, C)     f32
    *, tk,
):
    f32 = jnp.float32
    bf16 = jnp.bfloat16

    x = x_ref[0].astype(f32)                                 # (TN, C)
    q = q_ref[0]                                             # (H, TN, hd) bf16
    H, TN, hd = q.shape
    N = k_ref.shape[2]
    num_kc = N // tk

    # ---- attention: head-batched, online softmax over key chunks -----------
    if num_kc == 1:
        k = k_ref[0]
        v = v_ref[0]
        s = jnp.einsum('hqd,hkd->hqk', q, k,
                       preferred_element_type=f32)           # (H, TN, N)
        s = s - jnp.max(s, axis=-1, keepdims=True)
        e = jnp.exp(s)
        l = jnp.sum(e, axis=-1, keepdims=True)
        ao = jnp.einsum('hqk,hkd->hqd', e.astype(bf16), v,
                        preferred_element_type=f32)          # (H, TN, hd)
        ao = ao * pl.reciprocal(l, approx=True)              # EUP vrcp
    else:
        def body(ci, carry):
            m_p, l_p, a_p = carry
            start = pl.multiple_of(ci * tk, tk)
            kc = k_ref[0, :, pl.ds(start, tk), :]            # (H, TK, hd)
            vc = v_ref[0, :, pl.ds(start, tk), :]
            s = jnp.einsum('hqd,hkd->hqk', q, kc,
                           preferred_element_type=f32)       # (H, TN, TK)
            m_c = jnp.max(s, axis=-1, keepdims=True)
            m_n = jnp.maximum(m_p, m_c)
            alpha = jnp.exp(m_p - m_n)
            p = jnp.exp(s - m_n)
            l_n = alpha * l_p + jnp.sum(p, axis=-1, keepdims=True)
            a_n = alpha * a_p + jnp.einsum('hqk,hkd->hqd', p.astype(bf16), vc,
                                           preferred_element_type=f32)
            return m_n, l_n, a_n

        m0 = jnp.full((H, TN, 1), -jnp.inf, f32)
        l0 = jnp.zeros((H, TN, 1), f32)
        a0 = jnp.zeros((H, TN, hd), f32)
        _, l_f, a_f = jax.lax.fori_loop(0, num_kc, body, (m0, l0, a0))
        ao = a_f * pl.reciprocal(l_f, approx=True)           # (H, TN, hd)

    # ---- output projection: head reduction fused into the MXU accumulate ---
    # (no (H, TN, C) f32 intermediate; per-head dot accumulated into (TN, C))
    attn_out = jnp.dot(ao[0].astype(bf16), wprojr_ref[0],
                       preferred_element_type=f32)
    for h in range(1, H):
        attn_out = attn_out + jnp.dot(ao[h].astype(bf16), wprojr_ref[h],
                                      preferred_element_type=f32)

    x1 = x + attn_out + bproj_ref[...]                       # residual 1

    # ---- MLP branch ---------------------------------------------------------
    xn2 = _layer_norm(x1, ln2_w_ref[...], ln2_b_ref[...])
    hmid = jnp.dot(xn2.astype(bf16), w1_ref[...],
                   preferred_element_type=f32) + b1_ref[...]
    hmid = _gelu_exact(hmid)
    mlp_out = jnp.dot(hmid.astype(bf16), w2_ref[...],
                      preferred_element_type=f32) + b2_ref[...]

    o_ref[0] = (x1 + mlp_out).astype(o_ref.dtype)            # residual 2


# ----------------------------------------------------------------------------
# Wrapper
# ----------------------------------------------------------------------------
def _lora_block(x, p, *, num_heads, tn_max, tk_max, single_buffer_weights):
    B, N, C = x.shape
    H = num_heads
    assert C % H == 0
    hd = C // H
    Hm = p["w1"].shape[1]
    bf16 = jnp.bfloat16

    # Generation-aware VMEM budget and token-tile default.
    vmem_cap = _tpu_vmem_capacity_bytes()
    vmem_limit = min(int(vmem_cap * 0.85), vmem_cap - (12 << 20))
    if tn_max is None:
        tn_max = 256 if vmem_cap <= (64 << 20) else 512

    TN = N if N <= tn_max else tn_max
    assert N % TN == 0, "sequence length must be divisible by the token tile"
    TK = N if N <= tk_max else tk_max
    assert N % TK == 0, "sequence length must be divisible by the key tile"

    # Static operands (constant index maps) -> single-buffered: no VMEM wasted
    # on double-buffering weights that are DMA'd once.
    if single_buffer_weights:
        def wspec(shape, index_map):
            return pl.BlockSpec(shape, index_map, pipeline_mode=pl.Buffered(1))
    else:
        def wspec(shape, index_map):
            return pl.BlockSpec(shape, index_map)

    cparams = pltpu.CompilerParams(
        dimension_semantics=("parallel", "parallel"),
        vmem_limit_bytes=vmem_limit)

    # ---- Stage 1: LN1 + QKV projection, head-major split outputs ------------
    q, k, v = pl.pallas_call(
        _qkv_kernel,
        out_shape=(
            jax.ShapeDtypeStruct((B, H, N, hd), bf16),
            jax.ShapeDtypeStruct((B, H, N, hd), bf16),
            jax.ShapeDtypeStruct((B, H, N, hd), bf16),
        ),
        grid_spec=pltpu.PrefetchScalarGridSpec(
            num_scalar_prefetch=0,
            grid=(B, N // TN),
            in_specs=[
                pl.BlockSpec((1, TN, C), lambda b, i: (b, i, 0)),     # x
                wspec((1, C), lambda b, i: (0, 0)),                   # ln1_w
                wspec((1, C), lambda b, i: (0, 0)),                   # ln1_b
                wspec((C, 3 * C), lambda b, i: (0, 0)),               # wqkv
            ],
            out_specs=[
                pl.BlockSpec((1, H, TN, hd), lambda b, i: (b, 0, i, 0)),  # q
                pl.BlockSpec((1, H, TN, hd), lambda b, i: (b, 0, i, 0)),  # k
                pl.BlockSpec((1, H, TN, hd), lambda b, i: (b, 0, i, 0)),  # v
            ],
        ),
        compiler_params=cparams,
    )(x, p["ln1_w"], p["ln1_b"], p["wqkv"])

    # ---- Stage 2: attention + proj + residual + LN2 + MLP + residual --------
    out = pl.pallas_call(
        partial(_attn_mlp_kernel, tk=TK),
        out_shape=jax.ShapeDtypeStruct((B, N, C), x.dtype),
        grid_spec=pltpu.PrefetchScalarGridSpec(
            num_scalar_prefetch=0,
            grid=(B, N // TN),
            in_specs=[
                pl.BlockSpec((1, TN, C), lambda b, i: (b, i, 0)),        # x
                pl.BlockSpec((1, H, TN, hd), lambda b, i: (b, 0, i, 0)), # q
                wspec((1, H, N, hd), lambda b, i: (b, 0, 0, 0)),         # k
                wspec((1, H, N, hd), lambda b, i: (b, 0, 0, 0)),         # v
                wspec((H, hd, C), lambda b, i: (0, 0, 0)),               # wprojr
                wspec((1, C), lambda b, i: (0, 0)),                      # bproj
                wspec((1, C), lambda b, i: (0, 0)),                      # ln2_w
                wspec((1, C), lambda b, i: (0, 0)),                      # ln2_b
                wspec((C, Hm), lambda b, i: (0, 0)),                     # w1
                wspec((1, Hm), lambda b, i: (0, 0)),                     # b1
                wspec((Hm, C), lambda b, i: (0, 0)),                     # w2
                wspec((1, C), lambda b, i: (0, 0)),                      # b2
            ],
            out_specs=pl.BlockSpec((1, TN, C), lambda b, i: (b, i, 0)),
        ),
        compiler_params=cparams,
    )(x, q, k, v, p["wprojr"], p["bproj"], p["ln2_w"], p["ln2_b"],
      p["w1"], p["b1"], p["w2"], p["b2"])
    return out


def lora_block(x, prepared_params, *, num_heads, tn_max=None, tk_max=512):
    try:
        return _lora_block(x, prepared_params, num_heads=num_heads,
                           tn_max=tn_max, tk_max=tk_max,
                           single_buffer_weights=True)
    except Exception:
        # pl.Buffered(1) (single-buffered static operands) unsupported on this
        # jax/libtpu build -> fall back to default double-buffering.
        return _lora_block(x, prepared_params, num_heads=num_heads,
                           tn_max=tn_max, tk_max=tk_max,
                           single_buffer_weights=False)


# ----------------------------------------------------------------------------
# Pure-JAX f32 reference (same math, no Pallas) for verification.
# ----------------------------------------------------------------------------
def lora_block_ref(x, params, *, num_heads):
    B, N, C = x.shape
    hd = C // num_heads
    scale = hd ** (-0.5)

    def ln(x, w, b, eps=1e-5):
        m = jnp.mean(x, -1, keepdims=True)
        v = jnp.mean((x - m) ** 2, -1, keepdims=True)
        return (x - m) / jnp.sqrt(v + eps) * w + b

    xn = ln(x, params["ln1_w"], params["ln1_b"])
    qkv = xn @ params["wqkv"]                              # (B, N, 3C)
    qkv = qkv.reshape(B, N, 3, num_heads, hd).transpose(2, 0, 3, 1, 4)
    q, k, v = qkv[0], qkv[1], qkv[2]                       # (B, H, N, hd)
    attn = (q * scale) @ jnp.swapaxes(k, -2, -1)
    attn = jax.nn.softmax(attn, axis=-1)
    o = attn @ v                                           # (B, H, N, hd)
    o = jnp.swapaxes(o, 1, 2).reshape(B, N, C)
    o = o @ params["wproj"] + params["bproj"]
    x = x + o

    xn2 = ln(x, params["ln2_w"], params["ln2_b"])
    h = xn2 @ params["w1"] + params["b1"]
    h = 0.5 * h * (1.0 + jax.lax.erf(h * (2.0 ** -0.5)))
    m = h @ params["w2"] + params["b2"]
    return x + m


# ----------------------------------------------------------------------------
if __name__ == "__main__":
    def make_params(key, C, Hm):
        ks = jax.random.split(key, 8)
        params = {
            "ln1_w": jnp.ones((1, C), jnp.float32),
            "ln1_b": jnp.zeros((1, C), jnp.float32),
            "wqkv":  jax.random.normal(ks[0], (C, 3 * C), jnp.float32) * 0.05,
            "wproj": jax.random.normal(ks[1], (C, C), jnp.float32) * 0.05,
            "bproj": jax.random.normal(ks[2], (1, C), jnp.float32) * 0.01,
            "ln2_w": jnp.ones((1, C), jnp.float32),
            "ln2_b": jnp.zeros((1, C), jnp.float32),
            "w1":    jax.random.normal(ks[3], (C, Hm), jnp.float32) * 0.05,
            "b1":    jax.random.normal(ks[4], (1, Hm), jnp.float32) * 0.01,
            "w2":    jax.random.normal(ks[5], (Hm, C), jnp.float32) * 0.05,
            "b2":    jax.random.normal(ks[6], (1, C), jnp.float32) * 0.01,
        }
        return params, ks[7]

    root = jax.random.PRNGKey(0)
    key1, key2 = jax.random.split(root)

    # --- Test 1: tiny shapes (single key-chunk path) -------------------------
    B, N, C, H = 2, 8, 32, 4
    Hm = int(C * 4.0)
    params, kx = make_params(key1, C, Hm)
    x = jax.random.normal(kx, (B, N, C), jnp.float32)

    prep = prepare_params(params, num_heads=H)          # one-time, outside jit
    out = jax.block_until_ready(lora_block(x, prep, num_heads=H))
    ref = jax.block_until_ready(lora_block_ref(x, params, num_heads=H))
    assert out.shape == (B, N, C)
    err = jnp.max(jnp.abs(out - ref))
    assert jnp.allclose(out, ref, atol=3e-2, rtol=3e-2), f"test1 max err {err}"

    # --- Test 2: exercises token tiling + key-chunked online softmax ---------
    B2, N2, C2, H2 = 1, 256, 128, 4
    Hm2 = int(C2 * 4.0)
    params2, kx2 = make_params(key2, C2, Hm2)
    x2 = jax.random.normal(kx2, (B2, N2, C2), jnp.float32)

    prep2 = prepare_params(params2, num_heads=H2)
    out2 = jax.block_until_ready(
        lora_block(x2, prep2, num_heads=H2, tn_max=128, tk_max=128))
    ref2 = jax.block_until_ready(lora_block_ref(x2, params2, num_heads=H2))
    assert out2.shape == (B2, N2, C2)
    err2 = jnp.max(jnp.abs(out2 - ref2))
    assert jnp.allclose(out2, ref2, atol=3e-2, rtol=3e-2), f"test2 max err {err2}"

    print("KERNEL_OK")
</pallas_src>

<mosaic_0001>
module attributes {stable_mosaic.version = 11 : i64} {
  func.func @_qkv_kernel(%arg0: i32, %arg1: i32, %arg2: memref<1x8x32xf32, #tpu.memory_space<vmem>>, %arg3: memref<1x32xf32, #tpu.memory_space<vmem>>, %arg4: memref<1x32xf32, #tpu.memory_space<vmem>>, %arg5: memref<32x96xbf16, #tpu.memory_space<vmem>>, %arg6: memref<1x4x8x8xbf16, #tpu.memory_space<vmem>>, %arg7: memref<1x4x8x8xbf16, #tpu.memory_space<vmem>>, %arg8: memref<1x4x8x8xbf16, #tpu.memory_space<vmem>>) attributes {dimension_semantics = [#tpu.dimension_semantics<parallel>, #tpu.dimension_semantics<parallel>], iteration_bounds = array<i64: 2, 1>, scalar_prefetch = 0 : i64, scratch_operands = 0 : i64, tpu.core_type = #tpu.core_type<tc>, window_params = [{transform_indices = @transform_0, window_bounds = array<i64: 1, 8, 32>}, {pipeline_mode = #tpu.pipeline_mode<synchronous>, transform_indices = @transform_1, window_bounds = array<i64: 1, 32>}, {pipeline_mode = #tpu.pipeline_mode<synchronous>, transform_indices = @transform_2, window_bounds = array<i64: 1, 32>}, {pipeline_mode = #tpu.pipeline_mode<synchronous>, transform_indices = @transform_3, window_bounds = array<i64: 32, 96>}, {transform_indices = @transform_4, window_bounds = array<i64: 1, 4, 8, 8>}, {transform_indices = @transform_5, window_bounds = array<i64: 1, 4, 8, 8>}, {transform_indices = @transform_6, window_bounds = array<i64: 1, 4, 8, 8>}]} {
    %c0 = arith.constant 0 : index
    %c0_0 = arith.constant 0 : index
    %c0_1 = arith.constant 0 : index
    %0 = vector.load %arg2[%c0, %c0_0, %c0_1] : memref<1x8x32xf32, #tpu.memory_space<vmem>>, vector<1x8x32xf32>
    %1 = vector.shape_cast %0 : vector<1x8x32xf32> to vector<8x32xf32>
    %c0_2 = arith.constant 0 : index
    %c0_3 = arith.constant 0 : index
    %2 = vector.load %arg3[%c0_2, %c0_3] : memref<1x32xf32, #tpu.memory_space<vmem>>, vector<1x32xf32>
    %c0_4 = arith.constant 0 : index
    %c0_5 = arith.constant 0 : index
    %3 = vector.load %arg4[%c0_4, %c0_5] : memref<1x32xf32, #tpu.memory_space<vmem>>, vector<1x32xf32>
    %cst = arith.constant dense<0.000000e+00> : vector<8xf32>
    %4 = vector.multi_reduction <add>, %1, %cst [1] : vector<8x32xf32> to vector<8xf32>
    %5 = vector.shape_cast %4 : vector<8xf32> to vector<8x1xf32>
    %cst_6 = arith.constant 3.200000e+01 : f32
    %6 = vector.broadcast %cst_6 : f32 to vector<8x1xf32>
    %7 = arith.divf %5, %6 : vector<8x1xf32>
    %8 = vector.broadcast %7 : vector<8x1xf32> to vector<8x32xf32>
    %9 = arith.subf %1, %8 : vector<8x32xf32>
    %10 = arith.mulf %9, %9 : vector<8x32xf32>
    %cst_7 = arith.constant dense<0.000000e+00> : vector<8xf32>
    %11 = vector.multi_reduction <add>, %10, %cst_7 [1] : vector<8x32xf32> to vector<8xf32>
    %12 = vector.shape_cast %11 : vector<8xf32> to vector<8x1xf32>
    %cst_8 = arith.constant 3.200000e+01 : f32
    %13 = vector.broadcast %cst_8 : f32 to vector<8x1xf32>
    %14 = arith.divf %12, %13 : vector<8x1xf32>
    %cst_9 = arith.constant 9.99999974E-6 : f32
    %15 = vector.broadcast %cst_9 : f32 to vector<8x1xf32>
    %16 = arith.addf %14, %15 : vector<8x1xf32>
    %17 = math.rsqrt %16 : vector<8x1xf32>
    %18 = vector.broadcast %17 : vector<8x1xf32> to vector<8x32xf32>
    %19 = arith.mulf %9, %18 : vector<8x32xf32>
    %20 = vector.broadcast %2 : vector<1x32xf32> to vector<8x32xf32>
    %21 = arith.mulf %19, %20 : vector<8x32xf32>
    %22 = vector.broadcast %3 : vector<1x32xf32> to vector<8x32xf32>
    %23 = arith.addf %21, %22 : vector<8x32xf32>
    %24 = arith.truncf %23 : vector<8x32xf32> to vector<8x32xbf16>
    %c0_10 = arith.constant 0 : index
    %c0_11 = arith.constant 0 : index
    %25 = vector.load %arg5[%c0_10, %c0_11] : memref<32x96xbf16, #tpu.memory_space<vmem>>, vector<32x96xbf16>
    %cst_12 = arith.constant dense<0.000000e+00> : vector<8x96xf32>
    %26 = tpu.matmul %24, %25, %cst_12 {dimension_numbers = #tpu.dot_dimension_numbers<[1], [0], [0], [1], [0, 0, 1, 1], [], []>} : vector<8x32xbf16>, vector<32x96xbf16>, vector<8x96xf32> -> vector<8x96xf32>
    %27 = arith.truncf %26 : vector<8x96xf32> to vector<8x96xbf16>
    %28 = vector.extract_strided_slice %27 {offsets = [0, 0], sizes = [8, 8], strides = [1, 1]} : vector<8x96xbf16> to vector<8x8xbf16>
    %c0_13 = arith.constant 0 : index
    %c0_14 = arith.constant 0 : index
    %c0_15 = arith.constant 0 : index
    %c0_16 = arith.constant 0 : index
    %29 = vector.load %arg6[%c0_13, %c0_14, %c0_15, %c0_16] : memref<1x4x8x8xbf16, #tpu.memory_space<vmem>>, vector<1x1x8x8xbf16>
    %30 = vector.shape_cast %29 : vector<1x1x8x8xbf16> to vector<8x8xbf16>
    %31 = vector.shape_cast %28 : vector<8x8xbf16> to vector<1x1x8x8xbf16>
    tpu.vector_store %arg6[%c0_13, %c0_14, %c0_15, %c0_16], %31 {strides = array<i32>} : memref<1x4x8x8xbf16, #tpu.memory_space<vmem>>, vector<1x1x8x8xbf16>,
    %32 = vector.extract_strided_slice %27 {offsets = [0, 32], sizes = [8, 8], strides = [1, 1]} : vector<8x96xbf16> to vector<8x8xbf16>
    %c0_17 = arith.constant 0 : index
    %c0_18 = arith.constant 0 : index
    %c0_19 = arith.constant 0 : index
    %c0_20 = arith.constant 0 : index
    %33 = vector.load %arg7[%c0_17, %c0_18, %c0_19, %c0_20] : memref<1x4x8x8xbf16, #tpu.memory_space<vmem>>, vector<1x1x8x8xbf16>
    %34 = vector.shape_cast %33 : vector<1x1x8x8xbf16> to vector<8x8xbf16>
    %35 = vector.shape_cast %32 : vector<8x8xbf16> to vector<1x1x8x8xbf16>
    tpu.vector_store %arg7[%c0_17, %c0_18, %c0_19, %c0_20], %35 {strides = array<i32>} : memref<1x4x8x8xbf16, #tpu.memory_space<vmem>>, vector<1x1x8x8xbf16>,
    %36 = vector.extract_strided_slice %27 {offsets = [0, 64], sizes = [8, 8], strides = [1, 1]} : vector<8x96xbf16> to vector<8x8xbf16>
    %c0_21 = arith.constant 0 : index
    %c0_22 = arith.constant 0 : index
    %c0_23 = arith.constant 0 : index
    %c0_24 = arith.constant 0 : index
    %37 = vector.load %arg8[%c0_21, %c0_22, %c0_23, %c0_24] : memref<1x4x8x8xbf16, #tpu.memory_space<vmem>>, vector<1x1x8x8xbf16>
    %38 = vector.shape_cast %37 : vector<1x1x8x8xbf16> to vector<8x8xbf16>
    %39 = vector.shape_cast %36 : vector<8x8xbf16> to vector<1x1x8x8xbf16>
    tpu.vector_store %arg8[%c0_21, %c0_22, %c0_23, %c0_24], %39 {strides = array<i32>} : memref<1x4x8x8xbf16, #tpu.memory_space<vmem>>, vector<1x1x8x8xbf16>,
    %40 = vector.extract_strided_slice %27 {offsets = [0, 8], sizes = [8, 8], strides = [1, 1]} : vector<8x96xbf16> to vector<8x8xbf16>
    %c0_25 = arith.constant 0 : index
    %c1 = arith.constant 1 : index
    %c0_26 = arith.constant 0 : index
    %c0_27 = arith.constant 0 : index
    %41 = vector.load %arg6[%c0_25, %c1, %c0_26, %c0_27] : memref<1x4x8x8xbf16, #tpu.memory_space<vmem>>, vector<1x1x8x8xbf16>
    %42 = vector.shape_cast %41 : vector<1x1x8x8xbf16> to vector<8x8xbf16>
    %43 = vector.shape_cast %40 : vector<8x8xbf16> to vector<1x1x8x8xbf16>
    tpu.vector_store %arg6[%c0_25, %c1, %c0_26, %c0_27], %43 {strides = array<i32>} : memref<1x4x8x8xbf16, #tpu.memory_space<vmem>>, vector<1x1x8x8xbf16>,
    %44 = vector.extract_strided_slice %27 {offsets = [0, 40], sizes = [8, 8], strides = [1, 1]} : vector<8x96xbf16> to vector<8x8xbf16>
    %c0_28 = arith.constant 0 : index
    %c1_29 = arith.constant 1 : index
    %c0_30 = arith.constant 0 : index
    %c0_31 = arith.constant 0 : index
    %45 = vector.load %arg7[%c0_28, %c1_29, %c0_30, %c0_31] : memref<1x4x8x8xbf16, #tpu.memory_space<vmem>>, vector<1x1x8x8xbf16>
    %46 = vector.shape_cast %45 : vector<1x1x8x8xbf16> to vector<8x8xbf16>
    %47 = vector.shape_cast %44 : vector<8x8xbf16> to vector<1x1x8x8xbf16>
    tpu.vector_store %arg7[%c0_28, %c1_29, %c0_30, %c0_31], %47 {strides = array<i32>} : memref<1x4x8x8xbf16, #tpu.memory_space<vmem>>, vector<1x1x8x8xbf16>,
    %48 = vector.extract_strided_slice %27 {offsets = [0, 72], sizes = [8, 8], strides = [1, 1]} : vector<8x96xbf16> to vector<8x8xbf16>
    %c0_32 = arith.constant 0 : index
    %c1_33 = arith.constant 1 : index
    %c0_34 = arith.constant 0 : index
    %c0_35 = arith.constant 0 : index
    %49 = vector.load %arg8[%c0_32, %c1_33, %c0_34, %c0_35] : memref<1x4x8x8xbf16, #tpu.memory_space<vmem>>, vector<1x1x8x8xbf16>
    %50 = vector.shape_cast %49 : vector<1x1x8x8xbf16> to vector<8x8xbf16>
    %51 = vector.shape_cast %48 : vector<8x8xbf16> to vector<1x1x8x8xbf16>
    tpu.vector_store %arg8[%c0_32, %c1_33, %c0_34, %c0_35], %51 {strides = array<i32>} : memref<1x4x8x8xbf16, #tpu.memory_space<vmem>>, vector<1x1x8x8xbf16>,
    %52 = vector.extract_strided_slice %27 {offsets = [0, 16], sizes = [8, 8], strides = [1, 1]} : vector<8x96xbf16> to vector<8x8xbf16>
    %c0_36 = arith.constant 0 : index
    %c2 = arith.constant 2 : index
    %c0_37 = arith.constant 0 : index
    %c0_38 = arith.constant 0 : index
    %53 = vector.load %arg6[%c0_36, %c2, %c0_37, %c0_38] : memref<1x4x8x8xbf16, #tpu.memory_space<vmem>>, vector<1x1x8x8xbf16>
    %54 = vector.shape_cast %53 : vector<1x1x8x8xbf16> to vector<8x8xbf16>
    %55 = vector.shape_cast %52 : vector<8x8xbf16> to vector<1x1x8x8xbf16>
    tpu.vector_store %arg6[%c0_36, %c2, %c0_37, %c0_38], %55 {strides = array<i32>} : memref<1x4x8x8xbf16, #tpu.memory_space<vmem>>, vector<1x1x8x8xbf16>,
    %56 = vector.extract_strided_slice %27 {offsets = [0, 48], sizes = [8, 8], strides = [1, 1]} : vector<8x96xbf16> to vector<8x8xbf16>
    %c0_39 = arith.constant 0 : index
    %c2_40 = arith.constant 2 : index
    %c0_41 = arith.constant 0 : index
    %c0_42 = arith.constant 0 : index
    %57 = vector.load %arg7[%c0_39, %c2_40, %c0_41, %c0_42] : memref<1x4x8x8xbf16, #tpu.memory_space<vmem>>, vector<1x1x8x8xbf16>
    %58 = vector.shape_cast %57 : vector<1x1x8x8xbf16> to vector<8x8xbf16>
    %59 = vector.shape_cast %56 : vector<8x8xbf16> to vector<1x1x8x8xbf16>
    tpu.vector_store %arg7[%c0_39, %c2_40, %c0_41, %c0_42], %59 {strides = array<i32>} : memref<1x4x8x8xbf16, #tpu.memory_space<vmem>>, vector<1x1x8x8xbf16>,
    %60 = vector.extract_strided_slice %27 {offsets = [0, 80], sizes = [8, 8], strides = [1, 1]} : vector<8x96xbf16> to vector<8x8xbf16>
    %c0_43 = arith.constant 0 : index
    %c2_44 = arith.constant 2 : index
    %c0_45 = arith.constant 0 : index
    %c0_46 = arith.constant 0 : index
    %61 = vector.load %arg8[%c0_43, %c2_44, %c0_45, %c0_46] : memref<1x4x8x8xbf16, #tpu.memory_space<vmem>>, vector<1x1x8x8xbf16>
    %62 = vector.shape_cast %61 : vector<1x1x8x8xbf16> to vector<8x8xbf16>
    %63 = vector.shape_cast %60 : vector<8x8xbf16> to vector<1x1x8x8xbf16>
    tpu.vector_store %arg8[%c0_43, %c2_44, %c0_45, %c0_46], %63 {strides = array<i32>} : memref<1x4x8x8xbf16, #tpu.memory_space<vmem>>, vector<1x1x8x8xbf16>,
    %64 = vector.extract_strided_slice %27 {offsets = [0, 24], sizes = [8, 8], strides = [1, 1]} : vector<8x96xbf16> to vector<8x8xbf16>
    %c0_47 = arith.constant 0 : index
    %c3 = arith.constant 3 : index
    %c0_48 = arith.constant 0 : index
    %c0_49 = arith.constant 0 : index
    %65 = vector.load %arg6[%c0_47, %c3, %c0_48, %c0_49] : memref<1x4x8x8xbf16, #tpu.memory_space<vmem>>, vector<1x1x8x8xbf16>
    %66 = vector.shape_cast %65 : vector<1x1x8x8xbf16> to vector<8x8xbf16>
    %67 = vector.shape_cast %64 : vector<8x8xbf16> to vector<1x1x8x8xbf16>
    tpu.vector_store %arg6[%c0_47, %c3, %c0_48, %c0_49], %67 {strides = array<i32>} : memref<1x4x8x8xbf16, #tpu.memory_space<vmem>>, vector<1x1x8x8xbf16>,
    %68 = vector.extract_strided_slice %27 {offsets = [0, 56], sizes = [8, 8], strides = [1, 1]} : vector<8x96xbf16> to vector<8x8xbf16>
    %c0_50 = arith.constant 0 : index
    %c3_51 = arith.constant 3 : index
    %c0_52 = arith.constant 0 : index
    %c0_53 = arith.constant 0 : index
    %69 = vector.load %arg7[%c0_50, %c3_51, %c0_52, %c0_53] : memref<1x4x8x8xbf16, #tpu.memory_space<vmem>>, vector<1x1x8x8xbf16>
    %70 = vector.shape_cast %69 : vector<1x1x8x8xbf16> to vector<8x8xbf16>
    %71 = vector.shape_cast %68 : vector<8x8xbf16> to vector<1x1x8x8xbf16>
    tpu.vector_store %arg7[%c0_50, %c3_51, %c0_52, %c0_53], %71 {strides = array<i32>} : memref<1x4x8x8xbf16, #tpu.memory_space<vmem>>, vector<1x1x8x8xbf16>,
    %72 = vector.extract_strided_slice %27 {offsets = [0, 88], sizes = [8, 8], strides = [1, 1]} : vector<8x96xbf16> to vector<8x8xbf16>
    %c0_54 = arith.constant 0 : index
    %c3_55 = arith.constant 3 : index
    %c0_56 = arith.constant 0 : index
    %c0_57 = arith.constant 0 : index
    %73 = vector.load %arg8[%c0_54, %c3_55, %c0_56, %c0_57] : memref<1x4x8x8xbf16, #tpu.memory_space<vmem>>, vector<1x1x8x8xbf16>
    %74 = vector.shape_cast %73 : vector<1x1x8x8xbf16> to vector<8x8xbf16>
    %75 = vector.shape_cast %72 : vector<8x8xbf16> to vector<1x1x8x8xbf16>
    tpu.vector_store %arg8[%c0_54, %c3_55, %c0_56, %c0_57], %75 {strides = array<i32>} : memref<1x4x8x8xbf16, #tpu.memory_space<vmem>>, vector<1x1x8x8xbf16>,
    return
  }
  func.func @transform_0(%arg0: i32, %arg1: i32) -> (i32, i32, i32) {
    %c0_i32 = arith.constant 0 : i32
    %c0_i32_0 = arith.constant 0 : i32
    return %arg0, %arg1, %c0_i32 : i32, i32, i32
  }
  func.func @transform_1(%arg0: i32, %arg1: i32) -> (i32, i32) {
    %c0_i32 = arith.constant 0 : i32
    %c0_i32_0 = arith.constant 0 : i32
    %c0_i32_1 = arith.constant 0 : i32
    return %c0_i32, %c0_i32_0 : i32, i32
  }
  func.func @transform_2(%arg0: i32, %arg1: i32) -> (i32, i32) {
    %c0_i32 = arith.constant 0 : i32
    %c0_i32_0 = arith.constant 0 : i32
    %c0_i32_1 = arith.constant 0 : i32
    return %c0_i32, %c0_i32_0 : i32, i32
  }
  func.func @transform_3(%arg0: i32, %arg1: i32) -> (i32, i32) {
    %c0_i32 = arith.constant 0 : i32
    %c0_i32_0 = arith.constant 0 : i32
    %c0_i32_1 = arith.constant 0 : i32
    return %c0_i32, %c0_i32_0 : i32, i32
  }
  func.func @transform_4(%arg0: i32, %arg1: i32) -> (i32, i32, i32, i32) {
    %c0_i32 = arith.constant 0 : i32
    %c0_i32_0 = arith.constant 0 : i32
    %c0_i32_1 = arith.constant 0 : i32
    return %arg0, %c0_i32, %arg1, %c0_i32_0 : i32, i32, i32, i32
  }
  func.func @transform_5(%arg0: i32, %arg1: i32) -> (i32, i32, i32, i32) {
    %c0_i32 = arith.constant 0 : i32
    %c0_i32_0 = arith.constant 0 : i32
    %c0_i32_1 = arith.constant 0 : i32
    return %arg0, %c0_i32, %arg1, %c0_i32_0 : i32, i32, i32, i32
  }
  func.func @transform_6(%arg0: i32, %arg1: i32) -> (i32, i32, i32, i32) {
    %c0_i32 = arith.constant 0 : i32
    %c0_i32_0 = arith.constant 0 : i32
    %c0_i32_1 = arith.constant 0 : i32
    return %arg0, %c0_i32, %arg1, %c0_i32_0 : i32, i32, i32, i32
  }
}

module attributes {stable_mosaic.version = 11 : i64} {
  func.func @_qkv_kernel(%arg0: i32, %arg1: i32, %arg2: memref<1x8x32xf32, #tpu.memory_space<vmem>>, %arg3: memref<1x32xf32, #tpu.memory_space<vmem>>, %arg4: memref<1x32xf32, #tpu.memory_space<vmem>>, %arg5: memref<32x96xbf16, #tpu.memory_space<vmem>>, %arg6: memref<1x4x8x8xbf16, #tpu.memory_space<vmem>>, %arg7: memref<1x4x8x8xbf16, #tpu.memory_space<vmem>>, %arg8: memref<1x4x8x8xbf16, #tpu.memory_space<vmem>>) attributes {dimension_semantics = [#tpu.dimension_semantics<parallel>, #tpu.dimension_semantics<parallel>], iteration_bounds = array<i64: 2, 1>, scalar_prefetch = 0 : i64, scratch_operands = 0 : i64, tpu.core_type = #tpu.core_type<tc>, window_params = [{transform_indices = @transform_0, window_bounds = array<i64: 1, 8, 32>}, {pipeline_mode = #tpu.pipeline_mode<synchronous>, transform_indices = @transform_1, window_bounds = array<i64: 1, 32>}, {pipeline_mode = #tpu.pipeline_mode<synchronous>, transform_indices = @transform_2, window_bounds = array<i64: 1, 32>}, {pipeline_mode = #tpu.pipeline_mode<synchronous>, transform_indices = @transform_3, window_bounds = array<i64: 32, 96>}, {transform_indices = @transform_4, window_bounds = array<i64: 1, 4, 8, 8>}, {transform_indices = @transform_5, window_bounds = array<i64: 1, 4, 8, 8>}, {transform_indices = @transform_6, window_bounds = array<i64: 1, 4, 8, 8>}]} {
    %c0 = arith.constant 0 : index
    %c0_0 = arith.constant 0 : index
    %c0_1 = arith.constant 0 : index
    %0 = vector.load %arg2[%c0, %c0_0, %c0_1] : memref<1x8x32xf32, #tpu.memory_space<vmem>>, vector<1x8x32xf32>
    %1 = vector.shape_cast %0 : vector<1x8x32xf32> to vector<8x32xf32>
    %c0_2 = arith.constant 0 : index
    %c0_3 = arith.constant 0 : index
    %2 = vector.load %arg3[%c0_2, %c0_3] : memref<1x32xf32, #tpu.memory_space<vmem>>, vector<1x32xf32>
    %c0_4 = arith.constant 0 : index
    %c0_5 = arith.constant 0 : index
    %3 = vector.load %arg4[%c0_4, %c0_5] : memref<1x32xf32, #tpu.memory_space<vmem>>, vector<1x32xf32>
    %cst = arith.constant dense<0.000000e+00> : vector<8xf32>
    %4 = vector.multi_reduction <add>, %1, %cst [1] : vector<8x32xf32> to vector<8xf32>
    %5 = vector.shape_cast %4 : vector<8xf32> to vector<8x1xf32>
    %cst_6 = arith.constant 3.200000e+01 : f32
    %6 = vector.broadcast %cst_6 : f32 to vector<8x1xf32>
    %7 = arith.divf %5, %6 : vector<8x1xf32>
    %8 = vector.broadcast %7 : vector<8x1xf32> to vector<8x32xf32>
    %9 = arith.subf %1, %8 : vector<8x32xf32>
    %10 = arith.mulf %9, %9 : vector<8x32xf32>
    %cst_7 = arith.constant dense<0.000000e+00> : vector<8xf32>
    %11 = vector.multi_reduction <add>, %10, %cst_7 [1] : vector<8x32xf32> to vector<8xf32>
    %12 = vector.shape_cast %11 : vector<8xf32> to vector<8x1xf32>
    %cst_8 = arith.constant 3.200000e+01 : f32
    %13 = vector.broadcast %cst_8 : f32 to vector<8x1xf32>
    %14 = arith.divf %12, %13 : vector<8x1xf32>
    %cst_9 = arith.constant 9.99999974E-6 : f32
    %15 = vector.broadcast %cst_9 : f32 to vector<8x1xf32>
    %16 = arith.addf %14, %15 : vector<8x1xf32>
    %17 = math.rsqrt %16 : vector<8x1xf32>
    %18 = vector.broadcast %17 : vector<8x1xf32> to vector<8x32xf32>
    %19 = arith.mulf %9, %18 : vector<8x32xf32>
    %20 = vector.broadcast %2 : vector<1x32xf32> to vector<8x32xf32>
    %21 = arith.mulf %19, %20 : vector<8x32xf32>
    %22 = vector.broadcast %3 : vector<1x32xf32> to vector<8x32xf32>
    %23 = arith.addf %21, %22 : vector<8x32xf32>
    %24 = arith.truncf %23 : vector<8x32xf32> to vector<8x32xbf16>
    %c0_10 = arith.constant 0 : index
    %c0_11 = arith.constant 0 : index
    %25 = vector.load %arg5[%c0_10, %c0_11] : memref<32x96xbf16, #tpu.memory_space<vmem>>, vector<32x96xbf16>
    %cst_12 = arith.constant dense<0.000000e+00> : vector<8x96xf32>
    %26 = tpu.matmul %24, %25, %cst_12 {dimension_numbers = #tpu.dot_dimension_numbers<[1], [0], [0], [1], [0, 0, 1, 1], [], []>} : vector<8x32xbf16>, vector<32x96xbf16>, vector<8x96xf32> -> vector<8x96xf32>
    %27 = arith.truncf %26 : vector<8x96xf32> to vector<8x96xbf16>
    %28 = vector.extract_strided_slice %27 {offsets = [0, 0], sizes = [8, 8], strides = [1, 1]} : vector<8x96xbf16> to vector<8x8xbf16>
    %c0_13 = arith.constant 0 : index
    %c0_14 = arith.constant 0 : index
    %c0_15 = arith.constant 0 : index
    %c0_16 = arith.constant 0 : index
    %29 = vector.load %arg6[%c0_13, %c0_14, %c0_15, %c0_16] : memref<1x4x8x8xbf16, #tpu.memory_space<vmem>>, vector<1x1x8x8xbf16>
    %30 = vector.shape_cast %29 : vector<1x1x8x8xbf16> to vector<8x8xbf16>
    %31 = vector.shape_cast %28 : vector<8x8xbf16> to vector<1x1x8x8xbf16>
    tpu.vector_store %arg6[%c0_13, %c0_14, %c0_15, %c0_16], %31 {strides = array<i32>} : memref<1x4x8x8xbf16, #tpu.memory_space<vmem>>, vector<1x1x8x8xbf16>,
    %32 = vector.extract_strided_slice %27 {offsets = [0, 32], sizes = [8, 8], strides = [1, 1]} : vector<8x96xbf16> to vector<8x8xbf16>
    %c0_17 = arith.constant 0 : index
    %c0_18 = arith.constant 0 : index
    %c0_19 = arith.constant 0 : index
    %c0_20 = arith.constant 0 : index
    %33 = vector.load %arg7[%c0_17, %c0_18, %c0_19, %c0_20] : memref<1x4x8x8xbf16, #tpu.memory_space<vmem>>, vector<1x1x8x8xbf16>
    %34 = vector.shape_cast %33 : vector<1x1x8x8xbf16> to vector<8x8xbf16>
    %35 = vector.shape_cast %32 : vector<8x8xbf16> to vector<1x1x8x8xbf16>
    tpu.vector_store %arg7[%c0_17, %c0_18, %c0_19, %c0_20], %35 {strides = array<i32>} : memref<1x4x8x8xbf16, #tpu.memory_space<vmem>>, vector<1x1x8x8xbf16>,
    %36 = vector.extract_strided_slice %27 {offsets = [0, 64], sizes = [8, 8], strides = [1, 1]} : vector<8x96xbf16> to vector<8x8xbf16>
    %c0_21 = arith.constant 0 : index
    %c0_22 = arith.constant 0 : index
    %c0_23 = arith.constant 0 : index
    %c0_24 = arith.constant 0 : index
    %37 = vector.load %arg8[%c0_21, %c0_22, %c0_23, %c0_24] : memref<1x4x8x8xbf16, #tpu.memory_space<vmem>>, vector<1x1x8x8xbf16>
    %38 = vector.shape_cast %37 : vector<1x1x8x8xbf16> to vector<8x8xbf16>
    %39 = vector.shape_cast %36 : vector<8x8xbf16> to vector<1x1x8x8xbf16>
    tpu.vector_store %arg8[%c0_21, %c0_22, %c0_23, %c0_24], %39 {strides = array<i32>} : memref<1x4x8x8xbf16, #tpu.memory_space<vmem>>, vector<1x1x8x8xbf16>,
    %40 = vector.extract_strided_slice %27 {offsets = [0, 8], sizes = [8, 8], strides = [1, 1]} : vector<8x96xbf16> to vector<8x8xbf16>
    %c0_25 = arith.constant 0 : index
    %c1 = arith.constant 1 : index
    %c0_26 = arith.constant 0 : index
    %c0_27 = arith.constant 0 : index
    %41 = vector.load %arg6[%c0_25, %c1, %c0_26, %c0_27] : memref<1x4x8x8xbf16, #tpu.memory_space<vmem>>, vector<1x1x8x8xbf16>
    %42 = vector.shape_cast %41 : vector<1x1x8x8xbf16> to vector<8x8xbf16>
    %43 = vector.shape_cast %40 : vector<8x8xbf16> to vector<1x1x8x8xbf16>
    tpu.vector_store %arg6[%c0_25, %c1, %c0_26, %c0_27], %43 {strides = array<i32>} : memref<1x4x8x8xbf16, #tpu.memory_space<vmem>>, vector<1x1x8x8xbf16>,
    %44 = vector.extract_strided_slice %27 {offsets = [0, 40], sizes = [8, 8], strides = [1, 1]} : vector<8x96xbf16> to vector<8x8xbf16>
    %c0_28 = arith.constant 0 : index
    %c1_29 = arith.constant 1 : index
    %c0_30 = arith.constant 0 : index
    %c0_31 = arith.constant 0 : index
    %45 = vector.load %arg7[%c0_28, %c1_29, %c0_30, %c0_31] : memref<1x4x8x8xbf16, #tpu.memory_space<vmem>>, vector<1x1x8x8xbf16>
    %46 = vector.shape_cast %45 : vector<1x1x8x8xbf16> to vector<8x8xbf16>
    %47 = vector.shape_cast %44 : vector<8x8xbf16> to vector<1x1x8x8xbf16>
    tpu.vector_store %arg7[%c0_28, %c1_29, %c0_30, %c0_31], %47 {strides = array<i32>} : memref<1x4x8x8xbf16, #tpu.memory_space<vmem>>, vector<1x1x8x8xbf16>,
    %48 = vector.extract_strided_slice %27 {offsets = [0, 72], sizes = [8, 8], strides = [1, 1]} : vector<8x96xbf16> to vector<8x8xbf16>
    %c0_32 = arith.constant 0 : index
    %c1_33 = arith.constant 1 : index
    %c0_34 = arith.constant 0 : index
    %c0_35 = arith.constant 0 : index
    %49 = vector.load %arg8[%c0_32, %c1_33, %c0_34, %c0_35] : memref<1x4x8x8xbf16, #tpu.memory_space<vmem>>, vector<1x1x8x8xbf16>
    %50 = vector.shape_cast %49 : vector<1x1x8x8xbf16> to vector<8x8xbf16>
    %51 = vector.shape_cast %48 : vector<8x8xbf16> to vector<1x1x8x8xbf16>
    tpu.vector_store %arg8[%c0_32, %c1_33, %c0_34, %c0_35], %51 {strides = array<i32>} : memref<1x4x8x8xbf16, #tpu.memory_space<vmem>>, vector<1x1x8x8xbf16>,
    %52 = vector.extract_strided_slice %27 {offsets = [0, 16], sizes = [8, 8], strides = [1, 1]} : vector<8x96xbf16> to vector<8x8xbf16>
    %c0_36 = arith.constant 0 : index
    %c2 = arith.constant 2 : index
    %c0_37 = arith.constant 0 : index
    %c0_38 = arith.constant 0 : index
    %53 = vector.load %arg6[%c0_36, %c2, %c0_37, %c0_38] : memref<1x4x8x8xbf16, #tpu.memory_space<vmem>>, vector<1x1x8x8xbf16>
    %54 = vector.shape_cast %53 : vector<1x1x8x8xbf16> to vector<8x8xbf16>
    %55 = vector.shape_cast %52 : vector<8x8xbf16> to vector<1x1x8x8xbf16>
    tpu.vector_store %arg6[%c0_36, %c2, %c0_37, %c0_38], %55 {strides = array<i32>} : memref<1x4x8x8xbf16, #tpu.memory_space<vmem>>, vector<1x1x8x8xbf16>,
    %56 = vector.extract_strided_slice %27 {offsets = [0, 48], sizes = [8, 8], strides = [1, 1]} : vector<8x96xbf16> to vector<8x8xbf16>
    %c0_39 = arith.constant 0 : index
    %c2_40 = arith.constant 2 : index
    %c0_41 = arith.constant 0 : index
    %c0_42 = arith.constant 0 : index
    %57 = vector.load %arg7[%c0_39, %c2_40, %c0_41, %c0_42] : memref<1x4x8x8xbf16, #tpu.memory_space<vmem>>, vector<1x1x8x8xbf16>
    %58 = vector.shape_cast %57 : vector<1x1x8x8xbf16> to vector<8x8xbf16>
    %59 = vector.shape_cast %56 : vector<8x8xbf16> to vector<1x1x8x8xbf16>
    tpu.vector_store %arg7[%c0_39, %c2_40, %c0_41, %c0_42], %59 {strides = array<i32>} : memref<1x4x8x8xbf16, #tpu.memory_space<vmem>>, vector<1x1x8x8xbf16>,
    %60 = vector.extract_strided_slice %27 {offsets = [0, 80], sizes = [8, 8], strides = [1, 1]} : vector<8x96xbf16> to vector<8x8xbf16>
    %c0_43 = arith.constant 0 : index
    %c2_44 = arith.constant 2 : index
    %c0_45 = arith.constant 0 : index
    %c0_46 = arith.constant 0 : index
    %61 = vector.load %arg8[%c0_43, %c2_44, %c0_45, %c0_46] : memref<1x4x8x8xbf16, #tpu.memory_space<vmem>>, vector<1x1x8x8xbf16>
    %62 = vector.shape_cast %61 : vector<1x1x8x8xbf16> to vector<8x8xbf16>
    %63 = vector.shape_cast %60 : vector<8x8xbf16> to vector<1x1x8x8xbf16>
    tpu.vector_store %arg8[%c0_43, %c2_44, %c0_45, %c0_46], %63 {strides = array<i32>} : memref<1x4x8x8xbf16, #tpu.memory_space<vmem>>, vector<1x1x8x8xbf16>,
    %64 = vector.extract_strided_slice %27 {offsets = [0, 24], sizes = [8, 8], strides = [1, 1]} : vector<8x96xbf16> to vector<8x8xbf16>
    %c0_47 = arith.constant 0 : index
    %c3 = arith.constant 3 : index
    %c0_48 = arith.constant 0 : index
    %c0_49 = arith.constant 0 : index
    %65 = vector.load %arg6[%c0_47, %c3, %c0_48, %c0_49] : memref<1x4x8x8xbf16, #tpu.memory_space<vmem>>, vector<1x1x8x8xbf16>
    %66 = vector.shape_cast %65 : vector<1x1x8x8xbf16> to vector<8x8xbf16>
    %67 = vector.shape_cast %64 : vector<8x8xbf16> to vector<1x1x8x8xbf16>
    tpu.vector_store %arg6[%c0_47, %c3, %c0_48, %c0_49], %67 {strides = array<i32>} : memref<1x4x8x8xbf16, #tpu.memory_space<vmem>>, vector<1x1x8x8xbf16>,
    %68 = vector.extract_strided_slice %27 {offsets = [0, 56], sizes = [8, 8], strides = [1, 1]} : vector<8x96xbf16> to vector<8x8xbf16>
    %c0_50 = arith.constant 0 : index
    %c3_51 = arith.constant 3 : index
    %c0_52 = arith.constant 0 : index
    %c0_53 = arith.constant 0 : index
    %69 = vector.load %arg7[%c0_50, %c3_51, %c0_52, %c0_53] : memref<1x4x8x8xbf16, #tpu.memory_space<vmem>>, vector<1x1x8x8xbf16>
    %70 = vector.shape_cast %69 : vector<1x1x8x8xbf16> to vector<8x8xbf16>
    %71 = vector.shape_cast %68 : vector<8x8xbf16> to vector<1x1x8x8xbf16>
    tpu.vector_store %arg7[%c0_50, %c3_51, %c0_52, %c0_53], %71 {strides = array<i32>} : memref<1x4x8x8xbf16, #tpu.memory_space<vmem>>, vector<1x1x8x8xbf16>,
    %72 = vector.extract_strided_slice %27 {offsets = [0, 88], sizes = [8, 8], strides = [1, 1]} : vector<8x96xbf16> to vector<8x8xbf16>
    %c0_54 = arith.constant 0 : index
    %c3_55 = arith.constant 3 : index
    %c0_56 = arith.constant 0 : index
    %c0_57 = arith.constant 0 : index
    %73 = vector.load %arg8[%c0_54, %c3_55, %c0_56, %c0_57] : memref<1x4x8x8xbf16, #tpu.memory_space<vmem>>, vector<1x1x8x8xbf16>
    %74 = vector.shape_cast %73 : vector<1x1x8x8xbf16> to vector<8x8xbf16>
    %75 = vector.shape_cast %72 : vector<8x8xbf16> to vector<1x1x8x8xbf16>
    tpu.vector_store %arg8[%c0_54, %c3_55, %c0_56, %c0_57], %75 {strides = array<i32>} : memref<1x4x8x8xbf16, #tpu.memory_space<vmem>>, vector<1x1x8x8xbf16>,
    return
  }
  func.func @transform_0(%arg0: i32, %arg1: i32) -> (i32, i32, i32) {
    %c0_i32 = arith.constant 0 : i32
    %c0_i32_0 = arith.constant 0 : i32
    return %arg0, %arg1, %c0_i32 : i32, i32, i32
  }
  func.func @transform_1(%arg0: i32, %arg1: i32) -> (i32, i32) {
    %c0_i32 = arith.constant 0 : i32
    %c0_i32_0 = arith.constant 0 : i32
    %c0_i32_1 = arith.constant 0 : i32
    return %c0_i32, %c0_i32_0 : i32, i32
  }
  func.func @transform_2(%arg0: i32, %arg1: i32) -> (i32, i32) {
    %c0_i32 = arith.constant 0 : i32
    %c0_i32_0 = arith.constant 0 : i32
    %c0_i32_1 = arith.constant 0 : i32
    return %c0_i32, %c0_i32_0 : i32, i32
  }
  func.func @transform_3(%arg0: i32, %arg1: i32) -> (i32, i32) {
    %c0_i32 = arith.constant 0 : i32
    %c0_i32_0 = arith.constant 0 : i32
    %c0_i32_1 = arith.constant 0 : i32
    return %c0_i32, %c0_i32_0 : i32, i32
  }
  func.func @transform_4(%arg0: i32, %arg1: i32) -> (i32, i32, i32, i32) {
    %c0_i32 = arith.constant 0 : i32
    %c0_i32_0 = arith.constant 0 : i32
    %c0_i32_1 = arith.constant 0 : i32
    return %arg0, %c0_i32, %arg1, %c0_i32_0 : i32, i32, i32, i32
  }
  func.func @transform_5(%arg0: i32, %arg1: i32) -> (i32, i32, i32, i32) {
    %c0_i32 = arith.constant 0 : i32
    %c0_i32_0 = arith.constant 0 : i32
    %c0_i32_1 = arith.constant 0 : i32
    return %arg0, %c0_i32, %arg1, %c0_i32_0 : i32, i32, i32, i32
  }
  func.func @transform_6(%arg0: i32, %arg1: i32) -> (i32, i32, i32, i32) {
    %c0_i32 = arith.constant 0 : i32
    %c0_i32_0 = arith.constant 0 : i32
    %c0_i32_1 = arith.constant 0 : i32
    return %arg0, %c0_i32, %arg1, %c0_i32_0 : i32, i32, i32, i32
  }
}

</mosaic_0001>

<bundles_post_ra>
// kernel: tpu_custom_call.1
= control target key start
LH: loop header
LB: loop body
LE: loop exit
PB: predicated region body
PF: predicated region fallthrough
CT: control target
= control target key end

     0   :  { %12 = vsyncpa [#allocation3], 0  ;;  %s1626_s0 = inlined_call_operand.hbm [shape: f32[2,8,32], index: 0, kind: input, shape index: {}]   ;;  %s1627_s1 = inlined_call_operand.hbm [shape: f32[1,32], index: 1, kind: input, shape index: {}]   ;;  %s1628_s2 = inlined_call_operand.hbm [shape: f32[1,32], index: 2, kind: input, shape index: {}]   ;;  %s1629_s3 = inlined_call_operand.hbm [shape: bf16[32,96], index: 3, kind: input, shape index: {}]   ;;  %s1630_s4 = inlined_call_operand.hbm [shape: bf16[2,4,8,8], index: 4, kind: output, shape index: {0}]   ;;  %s1631_s5 = inlined_call_operand.hbm [shape: bf16[2,4,8,8], index: 5, kind: output, shape index: {1}]   ;;  %s1632_s6 = inlined_call_operand.hbm [shape: bf16[2,4,8,8], index: 6, kind: output, shape index: {2}]  }
   0x1   :  { %14 = vsyncpa [#allocation3 + $0x1], 0 }
   0x2   :  { %15 = vsyncpa [#allocation6], 0 }
   0x3   :  { %16 = vsyncpa [#allocation9], 0 }
   0x4   :  { %17 = vsyncpa [#allocation4], 0 }
   0x5   :  { %19 = vsyncpa [#allocation4 + $0x1], 0 }
   0x6   :  { %20 = vsyncpa [#allocation12], 0 }
   0x7   :  { %22 = vsyncpa [#allocation12 + $0x1], 0  ;;  %s1240_s21 = smov 0   ;;  %s1242_s22 = smov 0  }
   0x8   :  { %s1244_s23 = smov 0   ;;  %s1246_s24 = smov 0  }
   0x9   :  { %s1248_s25 = smov 0   ;;  %s1250_s26 = smov 0  }
   0xa LB: > { %s1271_s27 = sadd.s32 4294967295, %s1180_s26   ;;  %s1636_s28 = sadd.s32 4294967294, %s1180_s26   ;;  %s1180_s26 = sphi %s1250_s26, %s28_s26   ;;  %s1176_s25 = sphi %s1248_s25, %s1665_s25   ;;  %s1172_s24 = sphi %s1246_s24, %s1664_s24   ;;  %s1168_s23 = sphi %s1244_s23, %s1663_s23   ;;  %s1164_s22 = sphi %s1242_s22, %s1662_s22   ;;  %s1160_s21 = sphi %s1240_s21, %s1661_s21  }
   0xb   : > { %p62_p0 = scmp.ne.s32.totalorder %s1164_s22, %s1160_s21  ;;  %p1633_p1 = scmp.eq.s32.totalorder %s1271_s27, 0 }
   0xc   : > { %p157_p3 = scmp.eq.s32.totalorder %s1636_s28, 1  ;;  %p737_p5 = scmp.ge.s32.totalorder %s1180_s26, 1 }
   0xd   : > { %p1282_p4 = por %p1633_p1, %p62_p0  ;;  %p220_p7 = scmp.lt.s32.totalorder %s1180_s26, 3 }
   0xe   : > { %p1287_p6 = por %p157_p3, %p62_p0  ;;  %s1182_s8 = smov [#allocation5]  }
   0xf   : > { %s1641_s29 = scalar_select %p1282_p4, 1, 0 }
  0x10   : > { %s1642_s30 = scalar_select %p1287_p6, 1, 0 }
  0x11   : > { %p1292_p8 = pnand %p737_p5, %p220_p7  ;;  %s233_s9 = sshll.u32 %s1182_s8, 4  ;;  %s234_s9 = int_to_ptr.vmem [resolvable:$true] %s233_s9 }
  0x12   : > { %s1183_s10 = smov [#allocation7]   ;;  %s1184_s13 = smov [#allocation8]  }
  0x13   : > { %s1643_s7 = scalar_select %p1292_p8, 1, 0 }
  0x14   : > { %p813_p10 = pneg %p1292_p8  ;;  %s244_s11 = sshll.u32 %s1183_s10, 4  ;;  %s1305_s11 = int_to_ptr.vmem [resolvable:$true] %s244_s11 }
  0x15   : > { %s254_s14 = sshll.u32 %s1184_s13, 4  ;;  %s916_s17 = scalar_lea.hbm %s1627_s1, 16  ;;  %s1307_s14 = int_to_ptr.vmem [resolvable:$true] %s254_s14 }
  0x16   : > { %p1301_p11 = pnand %p813_p10, %p1633_p1  ;;  %p917_p12 = scmp.ne.s32.totalorder %s1627_s1, %s916_s17 }
  0x17   : > { %p923_p5 = scmp.lt.u32.totalorder %s916_s17, %s1627_s1 }
  0x18   : > { %p1317_p13 = pneg %p1301_p11 }
  0x1a   : > { %p919_p0 = pnand %p1317_p13, %p917_p12 }
  0x1c   : > { %p920_p3 = pneg %p919_p0 }
  0x1e   : > { %p925_p7 = pnand %p923_p5, %p920_p3 }
  0x20   : > { %928 = shalt.err (!%p925_p7)
}
  0x21   : > { %s929_s13 = scalar_lea.vmem %s234_s9, 16  ;;  %s936_s15 = scalar_lea.vmem %s234_s9, 32 }
  0x22   : > { %p930_p10 = scmp.ne.s32.totalorder %s234_s9, %s929_s13  ;;  %p937_p2 = scmp.lt.s32.totalorder %s234_s9, %s234_s9 }
  0x23   : > { %p938_p6 = scmp.lt.s32.totalorder %s936_s15, %s929_s13 }
  0x24   : > { %p932_p9 = pnand %p930_p10, %p1317_p13 }
  0x25   : > { %p939_p4 = por %p938_p6, %p937_p2 }
  0x26   : > { %p933_p1 = pneg %p932_p9 }
  0x28   : > { %p940_p8 = pnand %p939_p4, %p933_p1 }
  0x2a   : > { %943 = shalt.err (!%p940_p8)
}
  0x2b   : > { %816 = dma.hbm_to_vmem [thread:$0]  (!%p1301_p11), %s1627_s1, 16, %s234_s9, [#allocation6]  }
  0x2c   : > { %s944_s8 = scalar_lea.hbm %s1628_s2, 16 }
  0x2d   : > { %p945_p9 = scmp.ne.s32.totalorder %s1628_s2, %s944_s8  ;;  %p951_p1 = scmp.lt.u32.totalorder %s944_s8, %s1628_s2 }
  0x2f   : > { %p947_p12 = pnand %p945_p9, %p1317_p13 }
  0x31   : > { %p948_p2 = pneg %p947_p12 }
  0x33   : > { %p953_p4 = pnand %p951_p1, %p948_p2 }
  0x35   : > { %956 = shalt.err (!%p953_p4)
}
  0x36   : > { %s957_s9 = scalar_lea.vmem %s1305_s11, 16  ;;  %s964_s28 = scalar_lea.vmem %s1305_s11, 32 }
  0x37   : > { %p958_p6 = scmp.ne.s32.totalorder %s1305_s11, %s957_s9  ;;  %p965_p3 = scmp.lt.s32.totalorder %s1305_s11, %s1305_s11 }
  0x38   : > { %p966_p5 = scmp.lt.s32.totalorder %s964_s28, %s957_s9 }
  0x39   : > { %p960_p8 = pnand %p958_p6, %p1317_p13 }
  0x3a   : > { %p967_p7 = por %p966_p5, %p965_p3 }
  0x3b   : > { %p961_p0 = pneg %p960_p8 }
  0x3d   : > { %p968_p10 = pnand %p967_p7, %p961_p0 }
  0x3f   : > { %971 = shalt.err (!%p968_p10)
}
  0x40   : > { %819 = dma.hbm_to_vmem [thread:$0]  (!%p1301_p11), %s1628_s2, 16, %s1305_s11, [#allocation6]  }
  0x41   : > { %s972_s8 = scalar_lea.hbm %s1629_s3, 256 }
  0x42   : > { %p973_p9 = scmp.ne.s32.totalorder %s1629_s3, %s972_s8  ;;  %p979_p1 = scmp.lt.u32.totalorder %s972_s8, %s1629_s3 }
  0x44   : > { %p975_p12 = pnand %p973_p9, %p1317_p13 }
  0x46   : > { %p976_p2 = pneg %p975_p12 }
  0x48   : > { %p981_p4 = pnand %p979_p1, %p976_p2 }
  0x4a   : > { %984 = shalt.err (!%p981_p4)
}
  0x4b   : > { %s985_s11 = scalar_lea.vmem %s1307_s14, 256  ;;  %p993_p3 = scmp.lt.s32.totalorder %s1307_s14, %s1307_s14 }
  0x4c   : > { %p986_p6 = scmp.ne.s32.totalorder %s1307_s14, %s985_s11  ;;  %p994_p5 = scmp.lt.s32.totalorder %s985_s11, %s985_s11 }
  0x4e   : > { %p988_p8 = pnand %p986_p6, %p1317_p13  ;;  %p995_p7 = por %p994_p5, %p993_p3 }
  0x50   : > { %p989_p0 = pneg %p988_p8 }
  0x52   : > { %p996_p10 = pnand %p995_p7, %p989_p0 }
  0x54   : > { %999 = shalt.err (!%p996_p10)
}
  0x55   : > { %s1185_s28 = smov 64   ;;  %s1186_s20 = smov 4  }
  0x56   : > { %822 = dma.hbm_to_vmem [thread:$0]  (!%p1301_p11), %s1629_s3, 256, %s1307_s14, [#allocation9], %s1185_s28, %s1185_s28, %s1186_s20  }
  0x57   : > { %s49_s17 = sadd.s32 1, %s1168_s23  ;;  %s40_s19 = sadd.s32 1, %s1176_s25 }
  0x58   : > { %p56_p13 = scmp.ne.s32.totalorder %s1168_s23, %s1164_s22  ;;  %p42_p9 = scmp.ge.s32.totalorder %s40_s19, 2 }
  0x59   : > { %p57_p12 = scmp.eq.s32.totalorder %s1180_s26, 0  ;;  %p1646_p2 = scmp.eq.s32.totalorder %s1271_s27, 1 }
  0x5a   : > { %p840_p4 = scmp.lt.s32.totalorder %s1180_s26, 2  ;;  %s1667_s19 = smov (%p42_p9, %s40_s19), 0 }
  0x5b   : > { %p1387_p1 = por %p1646_p2, %p56_p13  ;;  %p58_p6 = por %p57_p12, %p56_p13 }
  0x5c   : > { %s268_s12 = sand.u32 1, %s1168_s23   ;;  %s44_s10 = ssub.s32 %s1176_s25, %s1667_s19 }
  0x5d   : > { %p47_p8 = scmp.eq.s32.totalorder %s44_s10, 0  ;;  %s742_s14 = sshll.u32 %s268_s12, 3 }
  0x5e   : > { %s743_s13 = sshll.u32 %s1176_s25, 7  ;;  %s272_s20 = scalar_lea.vmem [#allocation2], %s742_s14 }
  0x5f   : > { %s1399_s15 = scalar_select %p47_p8, %s1168_s23, %s49_s17  }
  0x60   : > { %s1404_s28 = scalar_lea.hbm %s1626_s0, %s743_s13  ;;  %s280_s16 = sshll.u32 %s272_s20, 4  ;;  %s1406_s16 = int_to_ptr.vmem [resolvable:$true] %s280_s16 }
  0x61   : > { %p1410_p11 = pnand %p840_p4, %p58_p6  ;;  %s269_s17 = scalar_lea.sflag [#allocation3], %s268_s12 }
  0x62   : > { %s1000_s10 = scalar_lea.hbm %s1404_s28, 128  ;;  %s1005_s9 = scalar_lea.hbm %s1626_s0, 256 }
  0x63   : > { %p1001_p0 = scmp.ne.s32.totalorder %s1404_s28, %s1000_s10  ;;  %p1002_p3 = pneg %p1410_p11 }
  0x64   : > { %p1006_p10 = scmp.lt.u32.totalorder %s1404_s28, %s1626_s0  ;;  %p1007_p13 = scmp.lt.u32.totalorder %s1005_s9, %s1000_s10 }
  0x65   : > { %p1003_p5 = pnand %p1002_p3, %p1001_p0  ;;  %p1009_p12 = scmp.lt.u32.totalorder %s1000_s10, %s1404_s28 }
  0x66   : > { %p1008_p9 = por %p1007_p13, %p1006_p10 }
  0x67   : > { %p1004_p7 = pneg %p1003_p5 }
  0x68   : > { %p1010_p2 = por %p1009_p12, %p1008_p9 }
  0x6a   : > { %p1011_p4 = pnand %p1010_p2, %p1004_p7 }
  0x6c   : > { %1014 = shalt.err (!%p1011_p4)
}
  0x6d   : > { %s1015_s12 = scalar_lea.vmem %s1406_s16, 128  ;;  %s1187_s14 = smov [#allocation2]  }
  0x6e   : > { %p1016_p6 = scmp.ne.s32.totalorder %s1406_s16, %s1015_s12  ;;  %s1020_s13 = sshll.u32 %s1187_s14, 4  ;;  %s1021_s13 = int_to_ptr.vmem [resolvable:$false] %s1020_s13 }
  0x6f   : > { %s1022_s11 = scalar_lea.vmem %s1021_s13, 256  ;;  %p1023_p5 = scmp.lt.s32.totalorder %s1406_s16, %s1021_s13 }
  0x70   : > { %p1018_p8 = pnand %p1016_p6, %p1002_p3  ;;  %p1024_p10 = scmp.lt.s32.totalorder %s1022_s11, %s1015_s12 }
  0x72   : > { %p1019_p0 = pneg %p1018_p8  ;;  %p1025_p13 = por %p1024_p10, %p1023_p5 }
  0x74   : > { %p1026_p9 = pnand %p1025_p13, %p1019_p0 }
  0x76   : > { %1029 = shalt.err (!%p1026_p9)
}
  0x77   : > { %826 = dma.hbm_to_vmem [thread:$0]  (!%p1410_p11), %s1404_s28, 128, %s1406_s16, %s269_s17  }
  0x78   : > { %p1649_p7 = scmp.ne.s32.totalorder %s1643_s7, 0 }
  0x79   : > { %s1442_s10 = sand.u32 (!%p1649_p7), 1, %s1164_s22   ;;  %p1650_p3 = scmp.ne.s32.totalorder (!%p1649_p7), %s1641_s29, 0 }
  0x7a   : > { %289 = sbr.rel (%p1649_p7) target bundleno = 854 (0x356), region = 36  ;;  %s745_s9 = sshll.u32 (!%p1649_p7), %s1442_s10, 3 }
  0x7b   : > { %s292_s20 = scalar_lea.sflag (!%p1649_p7), [#allocation3], %s1442_s10  ;;  %s295_s12 = scalar_lea.vmem (!%p1649_p7), [#allocation2], %s745_s9 }
  0x81   : > { %1139 = dma.done.wait (%p1650_p3), %s292_s20, 128  }
  0x82   : > { %1141 = vsyncadd (%p1650_p3), %s292_s20, 4294967168  ;;  %p1651_p12 = scmp.eq.s32.totalorder %s1271_s27, 0 }
  0x84   : > { %1143 = dma.done.wait (%p1651_p12), [#allocation6], 32   ;;  %p1652_p11 = pmov %p1651_p12 }
  0x86   : > { %1145 = vsyncadd (%p1652_p11), [#allocation6], 4294967264  ;;  %p1653_p2 = pmov %p1652_p11 }
  0x88   : > { %1147 = dma.done.wait (%p1653_p2), [#allocation9], 256   ;;  %p1654_p4 = pmov %p1653_p2 }
  0x89   : > { %vm350_vm0 = vcmask 261120   ;;  %v347_v0 = vld [vmem:[%s295_s12] sm:$0xff]  ;;  %v912_v7 = vld [vmem:[#allocation8] sm:$0xff]   ;;  %v1188_v8 = vmov 0.0   ;;  %vm1189_vm1 = vmmov 0   ;;  %s1462_s29 = sshll.u32 %s1442_s10, 4 }
  0x8a   : > { %1149 = vsyncadd (%p1654_p4), [#allocation9], 4294967040  ;;  %v351_v1 = vsel %vm350_vm0, %v347_v0, 0.0  ;;  %785 = vmatprep.subr.bf16.mxu0 %v1188_v8  ;;  %789 = vmatprep.mubr.msk.bf16.mxu0 %vm1189_vm1, %v1188_v8  ;;  %v913_v9 = vld [vmem:[#allocation8 + $0x8] sm:$0xff]   ;;  %v752_v14 = vld [vmem:[#allocation5] ss:$0 sm:$0xff] }
  0x8b   : > { %352 = vadd.xlane.f32.xlu0 %v351_v1  ;;  %786 = vmatpush3.bf16.msra.mxu0 %v912_v7  ;;  %v753_v16 = vld [vmem:[#allocation7] ss:$0 sm:$0xff]  ;;  %vm440_vm2 = vcmask 60416   ;;  %s1190_s7 = smov 80   ;;  %s1191_s28 = smov 96  }
  0x8c   : > { %787 = vmatprep.subr.bf16.mxu0 %v1188_v8  ;;  %s1465_s16 = scalar_lea.vmem [#allocation10], %s1462_s29  ;;  %s1192_s18 = smov 104  }
  0x8d   : > { %s1193_s17 = smov 88   ;;  %s1194_s14 = smov 72  }
  0x8e   : > { %s1637_s13 = smov 64   ;;  %s1196_s11 = smov 120  }
  0x8f   : > { %788 = vmatpush3.bf16.msra.mxu0 %v913_v9  ;;  %s1197_s9 = smov 56   ;;  %s1198_s20 = smov 112  }
  0x90   : > { %s1199_s12 = smov 48  }
 0x118   : > { %v353_v2 = vpop.xlane.xlu0 %352 }
 0x119   : > { %v355_v3 = vmul.f32 0.03125, %v353_v2 }
 0x11b   : > { %v356_v4 = vsub.f32 %v347_v0, %v355_v3 }
 0x11d   : > { %v357_v5 = vmul.f32 %v356_v4, %v356_v4 }
 0x11f   : > { %v358_v6 = vsel %vm350_vm0, %v357_v5, 0.0 }
 0x120   : > { %359 = vadd.xlane.f32.xlu0 %v358_v6 }
 0x1ad   : > { %v360_v10 = vpop.xlane.xlu0 %359 }
 0x1ae   : > { %v361_v11 = vmul.f32 0.03125, %v360_v10 }
 0x1b0   : > { %v362_v12 = vadd.f32 1e-05, %v361_v11 }
 0x1b2   : > { %914 = vrsqrt.f32 %v362_v12 }
 0x1bc   : > { %v915_v13 = vpop.eup %914 }
 0x1bd   : > { %v364_v15 = vmul.f32 %v915_v13, %v356_v4 }
 0x1bf   : > { %v371_v17 = vmul.f32 %v752_v14, %v364_v15 }
 0x1c1   : > { %v378_v18 = vadd.f32 %v753_v16, %v371_v17 }
 0x1c3   : > { %v379_v19 = vpack.c.bf16 %v378_v18, %v378_v18 }
 0x1c5   : > { %790 = vmatmul.mubr.msk.bf16.vlgmr.msra.gmra.mrb[0].mxu0 %vm350_vm0, %v379_v19 }
 0x298   : > { %v433_v20 = vpop.f32.mrb[0].mxu0 }
 0x299   : > { %v439_v21 = vpack.c.bf16 %v433_v20, %v433_v20  ;;  %v791_v22 = vpop.f32.mrb[1].mxu0 }
 0x29a   : > { %v436_v23 = vpop.f32.mrb[2].mxu0 }
 0x29b   : > { %473 = vrot.lane.b32.xlu0 %v439_v21, %s1190_s7  ;;  %445 = vrot.lane.b32.xlu1 %v439_v21, %s1191_s28  ;;  %v792_v24 = vpop.f32.mrb[3].mxu0  ;;  %441 = vst.msk [vmem:[%s1465_s16] sm:$0xf] %vm440_vm2, %v439_v21  ;;  %s1200_s7 = smov 40   ;;  %s338_s28 = scalar_lea.vmem [#allocation11], %s1462_s29 }
 0x29f   : > { %483 = vrot.lane.b32.xlu0 %v439_v21, %s1192_s18  ;;  %458 = vrot.lane.b32.xlu1 %v439_v21, %s1193_s17  ;;  %s540_s18 = sshll.u32 %s338_s28, 4  ;;  %s503_s17 = sand.u32 1, %s1271_s27   ;;  %s1480_s18 = int_to_ptr.vmem [resolvable:$true] %s540_s18 }
 0x2a0   : > { %s1030_s27 = scalar_lea.vmem %s1480_s18, 256 }
 0x2a1   : > { %p1031_p6 = scmp.ne.s32.totalorder %s1480_s18, %s1030_s27 }
 0x2a3   : > { %488 = vrot.lane.b32.xlu1 %v439_v21, %s1194_s14  ;;  %s1475_s14 = sshll.u32 %s1172_s24, 8  ;;  %s1489_s24 = scalar_lea.sflag [#allocation12], %s503_s17 }
 0x2a4   : > { %p1032_p8 = pnand %p1031_p6, %p1387_p1 }
 0x2a6   : > { %p1033_p0 = pneg %p1032_p8 }
 0x2a7   : > { %449 = vrot.lane.b32.xlu1 %v439_v21, %s1637_s13 }
 0x2ab   : > { %453 = vrot.lane.b32.xlu1 %v439_v21, %s1196_s11 }
 0x2af   : > { %463 = vrot.lane.b32.xlu1 %v439_v21, %s1197_s9 }
 0x2b3   : > { %468 = vrot.lane.b32.xlu1 %v439_v21, %s1198_s20  ;;  %s1486_s20 = scalar_lea.hbm %s1631_s5, %s1475_s14 }
 0x2b7   : > { %478 = vrot.lane.b32.xlu1 %v439_v21, %s1199_s12  ;;  %s1201_s12 = smov [#allocation11]  }
 0x2bb   : > { %493 = vrot.lane.b32.xlu1 %v439_v21, %s1200_s7  ;;  %s1034_s7 = sshll.u32 %s1201_s12, 4  ;;  %s1035_s7 = int_to_ptr.vmem [resolvable:$false] %s1034_s7 }
 0x2bc   : > { %s1036_s13 = scalar_lea.vmem %s1035_s7, 512  ;;  %p1037_p5 = scmp.lt.s32.totalorder %s1480_s18, %s1035_s7 }
 0x2bd   : > { %p1038_p10 = scmp.lt.s32.totalorder %s1036_s13, %s1030_s27 }
 0x2bf   : > { %p1039_p13 = por %p1038_p10, %p1037_p5 }
 0x2c1   : > { %p1040_p9 = pnand %p1039_p13, %p1033_p0 }
 0x30d   : > { %v474_v25 = vpop.permute.xlu0 %473  ;;  %v446_v26 = vpop.permute.xlu1 %445 }
 0x30e   : > { %762 = vst.msk [vmem:[%s338_s28 + $0x8] sm:$0xf] %vm440_vm2, %v474_v25  ;;  %448 = vst.msk [vmem:[%s338_s28] sm:$0xf] %vm440_vm2, %v446_v26 }
 0x311   : > { %v484_v27 = vpop.permute.xlu0 %483  ;;  %v459_v28 = vpop.permute.xlu1 %458 }
 0x312   : > { %764 = vst.msk [vmem:[%s1465_s16 + $0xc] sm:$0xf] %vm440_vm2, %v484_v27  ;;  %759 = vst.msk [vmem:[%s338_s28 + $0x4] sm:$0xf] %vm440_vm2, %v459_v28 }
 0x315   : > { %v489_v29 = vpop.permute.xlu1 %488 }
 0x316   : > { %765 = vst.msk [vmem:[%s338_s28 + $0xc] sm:$0xf] %vm440_vm2, %v489_v29 }
 0x317   : > { %1043 = shalt.err (!%p1040_p9)
}
 0x318   : > { %s1044_s28 = scalar_lea.hbm %s1486_s20, 256  ;;  %s1048_s9 = scalar_lea.hbm %s1631_s5, 512 }
 0x319   : > { %p1045_p7 = scmp.ne.s32.totalorder %s1486_s20, %s1044_s28  ;;  %p1049_p11 = scmp.lt.u32.totalorder %s1486_s20, %s1631_s5 }
 0x31a   : > { %p1050_p2 = scmp.lt.u32.totalorder %s1048_s9, %s1044_s28  ;;  %p1052_p6 = scmp.lt.u32.totalorder %s1044_s28, %s1486_s20 }
 0x31b   : > { %p1046_p3 = pnand %p1045_p7, %p1387_p1 }
 0x31c   : > { %p1051_p4 = por %p1050_p2, %p1049_p11 }
 0x31d   : > { %p1047_p12 = pneg %p1046_p3 }
 0x31e   : > { %p1053_p8 = por %p1052_p6, %p1051_p4 }
 0x320   : > { %p1054_p0 = pnand %p1053_p8, %p1047_p12 }
 0x322   : > { %1057 = shalt.err (!%p1054_p0)
}
 0x323   : > { %s1639_s13 = smov 4   ;;  %s1655_s27 = smov 64   ;;  %v450_v30 = vpop.permute.xlu1 %449 }
 0x324   : > { %808 = dma.vmem_to_hbm [thread:$0]  (%p1387_p1), %s1480_s18, 256, %s1486_s20, %s1489_s24, %s1655_s27, %s1655_s27, %s1639_s13  }
 0x325   : > { %s1517_s28 = scalar_lea.vmem [#allocation13], %s1462_s29  ;;  %s523_s17 = sshll.u32 %s1465_s16, 4  ;;  %s1526_s17 = int_to_ptr.vmem [resolvable:$true] %s523_s17 }
 0x326   : > { %452 = vst.msk [vmem:[%s1517_s28] sm:$0xf] %vm440_vm2, %v450_v30  ;;  %s1532_s29 = scalar_lea.hbm %s1630_s4, %s1475_s14  ;;  %s1058_s20 = scalar_lea.vmem %s1526_s17, 256 }
 0x327   : > { %v454_v31 = vpop.permute.xlu1 %453  ;;  %p1059_p5 = scmp.ne.s32.totalorder %s1526_s17, %s1058_s20  ;;  %s1203_s12 = smov [#allocation10]  }
 0x328   : > { %758 = vst.msk [vmem:[%s1465_s16 + $0x4] sm:$0xf] %vm440_vm2, %v454_v31  ;;  %s1062_s7 = sshll.u32 %s1203_s12, 4  ;;  %s1063_s7 = int_to_ptr.vmem [resolvable:$false] %s1062_s7 }
 0x329   : > { %p1060_p10 = pnand %p1059_p5, %p1387_p1  ;;  %s1064_s13 = scalar_lea.vmem %s1063_s7, 512 }
 0x32a   : > { %p1065_p9 = scmp.lt.s32.totalorder %s1526_s17, %s1063_s7  ;;  %p1066_p7 = scmp.lt.s32.totalorder %s1064_s13, %s1058_s20 }
 0x32b   : > { %v464_v32 = vpop.permute.xlu1 %463  ;;  %p1061_p13 = pneg %p1060_p10 }
 0x32c   : > { %760 = vst.msk [vmem:[%s1517_s28 + $0x4] sm:$0xf] %vm440_vm2, %v464_v32  ;;  %p1067_p3 = por %p1066_p7, %p1065_p9 }
 0x32e   : > { %p1068_p12 = pnand %p1067_p3, %p1061_p13 }
 0x32f   : > { %v469_v33 = vpop.permute.xlu1 %468 }
 0x330   : > { %761 = vst.msk [vmem:[%s1465_s16 + $0x8] sm:$0xf] %vm440_vm2, %v469_v33 }
 0x331   : > { %1071 = shalt.err (!%p1068_p12)
}
 0x332   : > { %s1072_s16 = scalar_lea.hbm %s1532_s29, 256  ;;  %s1076_s12 = scalar_lea.hbm %s1630_s4, 512 }
 0x333   : > { %p1073_p11 = scmp.ne.s32.totalorder %s1532_s29, %s1072_s16  ;;  %p1077_p6 = scmp.lt.u32.totalorder %s1532_s29, %s1630_s4 }
 0x334   : > { %p1078_p8 = scmp.lt.u32.totalorder %s1076_s12, %s1072_s16  ;;  %p1080_p5 = scmp.lt.u32.totalorder %s1072_s16, %s1532_s29 }
 0x335   : > { %p1074_p2 = pnand %p1073_p11, %p1387_p1 }
 0x336   : > { %p1079_p0 = por %p1078_p8, %p1077_p6 }
 0x337   : > { %p1075_p4 = pneg %p1074_p2 }
 0x338   : > { %p1081_p10 = por %p1080_p5, %p1079_p0 }
 0x33a   : > { %p1082_p13 = pnand %p1081_p10, %p1075_p4 }
 0x33c   : > { %1085 = shalt.err (!%p1082_p13)
}
 0x33d   : > { %s1656_s13 = smov 4   ;;  %s1657_s20 = scalar_lea.sflag [#allocation4], %s1442_s10  ;;  %v479_v34 = vpop.permute.xlu1 %478 }
 0x33e   : > { %807 = dma.vmem_to_hbm [thread:$0]  (%p1387_p1), %s1526_s17, 256, %s1532_s29, %s1657_s20, %s1655_s27, %s1655_s27, %s1656_s13  }
 0x33f   : > { %s557_s18 = sshll.u32 %s1517_s28, 4  ;;  %763 = vst.msk [vmem:[%s1517_s28 + $0x8] sm:$0xf] %vm440_vm2, %v479_v34  ;;  %s1572_s10 = scalar_lea.hbm %s1632_s6, %s1475_s14  ;;  %s1566_s18 = int_to_ptr.vmem [resolvable:$true] %s557_s18 }
 0x340   : > { %s1086_s9 = scalar_lea.vmem %s1566_s18, 256  ;;  %s1204_s17 = smov [#allocation13]  }
 0x341   : > { %v494_v35 = vpop.permute.xlu1 %493  ;;  %p1087_p9 = scmp.ne.s32.totalorder %s1566_s18, %s1086_s9  ;;  %s1090_s29 = sshll.u32 %s1204_s17, 4  ;;  %s1091_s29 = int_to_ptr.vmem [resolvable:$false] %s1090_s29 }
 0x342   : > { %766 = vst.msk [vmem:[%s1517_s28 + $0xc] sm:$0xf] %vm440_vm2, %v494_v35  ;;  %s1092_s12 = scalar_lea.vmem %s1091_s29, 512  ;;  %p1093_p12 = scmp.lt.s32.totalorder %s1566_s18, %s1091_s29 }
 0x343   : > { %p1088_p7 = pnand %p1087_p9, %p1387_p1  ;;  %p1094_p11 = scmp.lt.s32.totalorder %s1092_s12, %s1086_s9 }
 0x345   : > { %p1089_p3 = pneg %p1088_p7  ;;  %p1095_p2 = por %p1094_p11, %p1093_p12 }
 0x347   : > { %p1096_p4 = pnand %p1095_p2, %p1089_p3 }
 0x349   : > { %1099 = shalt.err (!%p1096_p4)
}
 0x34a   : > { %s1100_s14 = scalar_lea.hbm %s1572_s10, 256  ;;  %s1104_s20 = scalar_lea.hbm %s1632_s6, 512 }
 0x34b   : > { %p1101_p6 = scmp.ne.s32.totalorder %s1572_s10, %s1100_s14  ;;  %p1105_p5 = scmp.lt.u32.totalorder %s1572_s10, %s1632_s6 }
 0x34c   : > { %p1106_p10 = scmp.lt.u32.totalorder %s1104_s20, %s1100_s14  ;;  %p1108_p9 = scmp.lt.u32.totalorder %s1100_s14, %s1572_s10 }
 0x34d   : > { %p1102_p8 = pnand %p1101_p6, %p1387_p1 }
 0x34e   : > { %p1107_p13 = por %p1106_p10, %p1105_p5 }
 0x34f   : > { %p1103_p0 = pneg %p1102_p8 }
 0x350   : > { %p1109_p7 = por %p1108_p9, %p1107_p13 }
 0x352   : > { %p1110_p3 = pnand %p1109_p7, %p1103_p0 }
 0x354   : > { %1113 = shalt.err (!%p1110_p3)
}
 0x355   : > { %809 = dma.vmem_to_hbm [thread:$0]  (%p1387_p1), %s1566_s18, 256, %s1572_s10, %s1489_s24, %s1655_s27, %s1655_s27, %s1656_s13  }
 0x356 PF: > { %s572_s9 = sand.u32 1, %s1160_s21   ;;  %p1658_p12 = scmp.ne.s32.totalorder %s1642_s30, 0 }
 0x357   : > { %p1659_p11 = scmp.ge.s32.totalorder %s1180_s26, 2  ;;  %s573_s17 = scalar_lea.sflag [#allocation4], %s572_s9 }
 0x359   : > { %p828_p2 = pnand %p1659_p11, %p1658_p12 }
 0x35b   : > { %1151 = dma.done.wait (!%p828_p2), %s573_s17, 256  }
 0x35c   : > { %1153 = vsyncadd (!%p828_p2), %s573_s17, 4294967040  ;;  %s1660_s8 = sadd.s32 4294967294, %s1180_s26  }
 0x35d   : > { %s581_s29 = sand.u32 1, %s1660_s8  }
 0x35e   : > { %s582_s12 = scalar_lea.sflag [#allocation12], %s581_s29 }
 0x35f   : > { %1155 = dma.done.wait (!%p828_p2), %s582_s12, 512  }
 0x360   : > { %1157 = vsyncadd (!%p828_p2), %s582_s12, 4294966784  ;;  %s28_s26 = sadd.s32 1, %s1180_s26   ;;  %s1661_s21 = smov %s1164_s22 }
 0x361   : > { %p25_p1 = scmp.ge.s32.totalorder %s28_s26, 4   ;;  %s1662_s22 = smov %s1168_s23 }
 0x362   : > { %s1663_s23 = smov %s1399_s15  ;;  %s1664_s24 = smov %s1176_s25 }
 0x363   : > { %s1665_s25 = smov %s1667_s19  ;;  %27 = sbr.rel (!%p25_p1) target bundleno = 10 (0xa), region = 134 }
 0x36a   :  { %596 = vsyncpa [#allocation3], 1 }
 0x36b   :  { %598 = vsyncpa [#allocation3 + $0x1], 1 }
 0x36c   :  { %599 = vsyncpa [#allocation6], 1 }
 0x36d   :  { %600 = vsyncpa [#allocation9], 1 }
 0x36e   :  { %601 = vsyncpa [#allocation4], 1 }
 0x36f   :  { %603 = vsyncpa [#allocation4 + $0x1], 1 }
 0x370   :  { %604 = vsyncpa [#allocation12], 1 }
 0x371   :  { %606 = vsyncpa [#allocation12 + $0x1], 1 }

// kernel: tpu_custom_call.1
= control target key start
LH: loop header
LB: loop body
LE: loop exit
PB: predicated region body
PF: predicated region fallthrough
CT: control target
= control target key end

     0   :  { %12 = vsyncpa [#allocation3], 0  ;;  %s1626_s0 = inlined_call_operand.hbm [shape: f32[2,8,32], index: 0, kind: input, shape index: {}]   ;;  %s1627_s1 = inlined_call_operand.hbm [shape: f32[1,32], index: 1, kind: input, shape index: {}]   ;;  %s1628_s2 = inlined_call_operand.hbm [shape: f32[1,32], index: 2, kind: input, shape index: {}]   ;;  %s1629_s3 = inlined_call_operand.hbm [shape: bf16[32,96], index: 3, kind: input, shape index: {}]   ;;  %s1630_s4 = inlined_call_operand.hbm [shape: bf16[2,4,8,8], index: 4, kind: output, shape index: {0}]   ;;  %s1631_s5 = inlined_call_operand.hbm [shape: bf16[2,4,8,8], index: 5, kind: output, shape index: {1}]   ;;  %s1632_s6 = inlined_call_operand.hbm [shape: bf16[2,4,8,8], index: 6, kind: output, shape index: {2}]  }
   0x1   :  { %14 = vsyncpa [#allocation3 + $0x1], 0 }
   0x2   :  { %15 = vsyncpa [#allocation6], 0 }
   0x3   :  { %16 = vsyncpa [#allocation9], 0 }
   0x4   :  { %17 = vsyncpa [#allocation4], 0 }
   0x5   :  { %19 = vsyncpa [#allocation4 + $0x1], 0 }
   0x6   :  { %20 = vsyncpa [#allocation12], 0 }
   0x7   :  { %22 = vsyncpa [#allocation12 + $0x1], 0  ;;  %s1240_s21 = smov 0   ;;  %s1242_s22 = smov 0  }
   0x8   :  { %s1244_s23 = smov 0   ;;  %s1246_s24 = smov 0  }
   0x9   :  { %s1248_s25 = smov 0   ;;  %s1250_s26 = smov 0  }
   0xa LB: > { %s1271_s27 = sadd.s32 4294967295, %s1180_s26   ;;  %s1636_s28 = sadd.s32 4294967294, %s1180_s26   ;;  %s1180_s26 = sphi %s1250_s26, %s28_s26   ;;  %s1176_s25 = sphi %s1248_s25, %s1665_s25   ;;  %s1172_s24 = sphi %s1246_s24, %s1664_s24   ;;  %s1168_s23 = sphi %s1244_s23, %s1663_s23   ;;  %s1164_s22 = sphi %s1242_s22, %s1662_s22   ;;  %s1160_s21 = sphi %s1240_s21, %s1661_s21  }
   0xb   : > { %p62_p0 = scmp.ne.s32.totalorder %s1164_s22, %s1160_s21  ;;  %p1633_p1 = scmp.eq.s32.totalorder %s1271_s27, 0 }
   0xc   : > { %p157_p3 = scmp.eq.s32.totalorder %s1636_s28, 1  ;;  %p737_p5 = scmp.ge.s32.totalorder %s1180_s26, 1 }
   0xd   : > { %p1282_p4 = por %p1633_p1, %p62_p0  ;;  %p220_p7 = scmp.lt.s32.totalorder %s1180_s26, 3 }
   0xe   : > { %p1287_p6 = por %p157_p3, %p62_p0  ;;  %s1182_s8 = smov [#allocation5]  }
   0xf   : > { %s1641_s29 = scalar_select %p1282_p4, 1, 0 }
  0x10   : > { %s1642_s30 = scalar_select %p1287_p6, 1, 0 }
  0x11   : > { %p1292_p8 = pnand %p737_p5, %p220_p7  ;;  %s233_s9 = sshll.u32 %s1182_s8, 4  ;;  %s234_s9 = int_to_ptr.vmem [resolvable:$true] %s233_s9 }
  0x12   : > { %s1183_s10 = smov [#allocation7]   ;;  %s1184_s13 = smov [#allocation8]  }
  0x13   : > { %s1643_s7 = scalar_select %p1292_p8, 1, 0 }
  0x14   : > { %p813_p10 = pneg %p1292_p8  ;;  %s244_s11 = sshll.u32 %s1183_s10, 4  ;;  %s1305_s11 = int_to_ptr.vmem [resolvable:$true] %s244_s11 }
  0x15   : > { %s254_s14 = sshll.u32 %s1184_s13, 4  ;;  %s916_s17 = scalar_lea.hbm %s1627_s1, 16  ;;  %s1307_s14 = int_to_ptr.vmem [resolvable:$true] %s254_s14 }
  0x16   : > { %p1301_p11 = pnand %p813_p10, %p1633_p1  ;;  %p917_p12 = scmp.ne.s32.totalorder %s1627_s1, %s916_s17 }
  0x17   : > { %p923_p5 = scmp.lt.u32.totalorder %s916_s17, %s1627_s1 }
  0x18   : > { %p1317_p13 = pneg %p1301_p11 }
  0x1a   : > { %p919_p0 = pnand %p1317_p13, %p917_p12 }
  0x1c   : > { %p920_p3 = pneg %p919_p0 }
  0x1e   : > { %p925_p7 = pnand %p923_p5, %p920_p3 }
  0x20   : > { %928 = shalt.err (!%p925_p7)
}
  0x21   : > { %s929_s13 = scalar_lea.vmem %s234_s9, 16  ;;  %s936_s15 = scalar_lea.vmem %s234_s9, 32 }
  0x22   : > { %p930_p10 = scmp.ne.s32.totalorder %s234_s9, %s929_s13  ;;  %p937_p2 = scmp.lt.s32.totalorder %s234_s9, %s234_s9 }
  0x23   : > { %p938_p6 = scmp.lt.s32.totalorder %s936_s15, %s929_s13 }
  0x24   : > { %p932_p9 = pnand %p930_p10, %p1317_p13 }
  0x25   : > { %p939_p4 = por %p938_p6, %p937_p2 }
  0x26   : > { %p933_p1 = pneg %p932_p9 }
  0x28   : > { %p940_p8 = pnand %p939_p4, %p933_p1 }
  0x2a   : > { %943 = shalt.err (!%p940_p8)
}
  0x2b   : > { %816 = dma.hbm_to_vmem [thread:$0]  (!%p1301_p11), %s1627_s1, 16, %s234_s9, [#allocation6]  }
  0x2c   : > { %s944_s8 = scalar_lea.hbm %s1628_s2, 16 }
  0x2d   : > { %p945_p9 = scmp.ne.s32.totalorder %s1628_s2, %s944_s8  ;;  %p951_p1 = scmp.lt.u32.totalorder %s944_s8, %s1628_s2 }
  0x2f   : > { %p947_p12 = pnand %p945_p9, %p1317_p13 }
  0x31   : > { %p948_p2 = pneg %p947_p12 }
  0x33   : > { %p953_p4 = pnand %p951_p1, %p948_p2 }
  0x35   : > { %956 = shalt.err (!%p953_p4)
}
  0x36   : > { %s957_s9 = scalar_lea.vmem %s1305_s11, 16  ;;  %s964_s28 = scalar_lea.vmem %s1305_s11, 32 }
  0x37   : > { %p958_p6 = scmp.ne.s32.totalorder %s1305_s11, %s957_s9  ;;  %p965_p3 = scmp.lt.s32.totalorder %s1305_s11, %s1305_s11 }
  0x38   : > { %p966_p5 = scmp.lt.s32.totalorder %s964_s28, %s957_s9 }
  0x39   : > { %p960_p8 = pnand %p958_p6, %p1317_p13 }
  0x3a   : > { %p967_p7 = por %p966_p5, %p965_p3 }
  0x3b   : > { %p961_p0 = pneg %p960_p8 }
  0x3d   : > { %p968_p10 = pnand %p967_p7, %p961_p0 }
  0x3f   : > { %971 = shalt.err (!%p968_p10)
}
  0x40   : > { %819 = dma.hbm_to_vmem [thread:$0]  (!%p1301_p11), %s1628_s2, 16, %s1305_s11, [#allocation6]  }
  0x41   : > { %s972_s8 = scalar_lea.hbm %s1629_s3, 256 }
  0x42   : > { %p973_p9 = scmp.ne.s32.totalorder %s1629_s3, %s972_s8  ;;  %p979_p1 = scmp.lt.u32.totalorder %s972_s8, %s1629_s3 }
  0x44   : > { %p975_p12 = pnand %p973_p9, %p1317_p13 }
  0x46   : > { %p976_p2 = pneg %p975_p12 }
  0x48   : > { %p981_p4 = pnand %p979_p1, %p976_p2 }
  0x4a   : > { %984 = shalt.err (!%p981_p4)
}
  0x4b   : > { %s985_s11 = scalar_lea.vmem %s1307_s14, 256  ;;  %p993_p3 = scmp.lt.s32.totalorder %s1307_s14, %s1307_s14 }
  0x4c   : > { %p986_p6 = scmp.ne.s32.totalorder %s1307_s14, %s985_s11  ;;  %p994_p5 = scmp.lt.s32.totalorder %s985_s11, %s985_s11 }
  0x4e   : > { %p988_p8 = pnand %p986_p6, %p1317_p13  ;;  %p995_p7 = por %p994_p5, %p993_p3 }
  0x50   : > { %p989_p0 = pneg %p988_p8 }
  0x52   : > { %p996_p10 = pnand %p995_p7, %p989_p0 }
  0x54   : > { %999 = shalt.err (!%p996_p10)
}
  0x55   : > { %s1185_s28 = smov 64   ;;  %s1186_s20 = smov 4  }
  0x56   : > { %822 = dma.hbm_to_vmem [thread:$0]  (!%p1301_p11), %s1629_s3, 256, %s1307_s14, [#allocation9], %s1185_s28, %s1185_s28, %s1186_s20  }
  0x57   : > { %s49_s17 = sadd.s32 1, %s1168_s23  ;;  %s40_s19 = sadd.s32 1, %s1176_s25 }
  0x58   : > { %p56_p13 = scmp.ne.s32.totalorder %s1168_s23, %s1164_s22  ;;  %p42_p9 = scmp.ge.s32.totalorder %s40_s19, 2 }
  0x59   : > { %p57_p12 = scmp.eq.s32.totalorder %s1180_s26, 0  ;;  %p1646_p2 = scmp.eq.s32.totalorder %s1271_s27, 1 }
  0x5a   : > { %p840_p4 = scmp.lt.s32.totalorder %s1180_s26, 2  ;;  %s1667_s19 = smov (%p42_p9, %s40_s19), 0 }
  0x5b   : > { %p1387_p1 = por %p1646_p2, %p56_p13  ;;  %p58_p6 = por %p57_p12, %p56_p13 }
  0x5c   : > { %s268_s12 = sand.u32 1, %s1168_s23   ;;  %s44_s10 = ssub.s32 %s1176_s25, %s1667_s19 }
  0x5d   : > { %p47_p8 = scmp.eq.s32.totalorder %s44_s10, 0  ;;  %s742_s14 = sshll.u32 %s268_s12, 3 }
  0x5e   : > { %s743_s13 = sshll.u32 %s1176_s25, 7  ;;  %s272_s20 = scalar_lea.vmem [#allocation2], %s742_s14 }
  0x5f   : > { %s1399_s15 = scalar_select %p47_p8, %s1168_s23, %s49_s17  }
  0x60   : > { %s1404_s28 = scalar_lea.hbm %s1626_s0, %s743_s13  ;;  %s280_s16 = sshll.u32 %s272_s20, 4  ;;  %s1406_s16 = int_to_ptr.vmem [resolvable:$true] %s280_s16 }
  0x61   : > { %p1410_p11 = pnand %p840_p4, %p58_p6  ;;  %s269_s17 = scalar_lea.sflag [#allocation3], %s268_s12 }
  0x62   : > { %s1000_s10 = scalar_lea.hbm %s1404_s28, 128  ;;  %s1005_s9 = scalar_lea.hbm %s1626_s0, 256 }
  0x63   : > { %p1001_p0 = scmp.ne.s32.totalorder %s1404_s28, %s1000_s10  ;;  %p1002_p3 = pneg %p1410_p11 }
  0x64   : > { %p1006_p10 = scmp.lt.u32.totalorder %s1404_s28, %s1626_s0  ;;  %p1007_p13 = scmp.lt.u32.totalorder %s1005_s9, %s1000_s10 }
  0x65   : > { %p1003_p5 = pnand %p1002_p3, %p1001_p0  ;;  %p1009_p12 = scmp.lt.u32.totalorder %s1000_s10, %s1404_s28 }
  0x66   : > { %p1008_p9 = por %p1007_p13, %p1006_p10 }
  0x67   : > { %p1004_p7 = pneg %p1003_p5 }
  0x68   : > { %p1010_p2 = por %p1009_p12, %p1008_p9 }
  0x6a   : > { %p1011_p4 = pnand %p1010_p2, %p1004_p7 }
  0x6c   : > { %1014 = shalt.err (!%p1011_p4)
}
  0x6d   : > { %s1015_s12 = scalar_lea.vmem %s1406_s16, 128  ;;  %s1187_s14 = smov [#allocation2]  }
  0x6e   : > { %p1016_p6 = scmp.ne.s32.totalorder %s1406_s16, %s1015_s12  ;;  %s1020_s13 = sshll.u32 %s1187_s14, 4  ;;  %s1021_s13 = int_to_ptr.vmem [resolvable:$false] %s1020_s13 }
  0x6f   : > { %s1022_s11 = scalar_lea.vmem %s1021_s13, 256  ;;  %p1023_p5 = scmp.lt.s32.totalorder %s1406_s16, %s1021_s13 }
  0x70   : > { %p1018_p8 = pnand %p1016_p6, %p1002_p3  ;;  %p1024_p10 = scmp.lt.s32.totalorder %s1022_s11, %s1015_s12 }
  0x72   : > { %p1019_p0 = pneg %p1018_p8  ;;  %p1025_p13 = por %p1024_p10, %p1023_p5 }
  0x74   : > { %p1026_p9 = pnand %p1025_p13, %p1019_p0 }
  0x76   : > { %1029 = shalt.err (!%p1026_p9)
}
  0x77   : > { %826 = dma.hbm_to_vmem [thread:$0]  (!%p1410_p11), %s1404_s28, 128, %s1406_s16, %s269_s17  }
  0x78   : > { %p1649_p7 = scmp.ne.s32.totalorder %s1643_s7, 0 }
  0x79   : > { %s1442_s10 = sand.u32 (!%p1649_p7), 1, %s1164_s22   ;;  %p1650_p3 = scmp.ne.s32.totalorder (!%p1649_p7), %s1641_s29, 0 }
  0x7a   : > { %289 = sbr.rel (%p1649_p7) target bundleno = 854 (0x356), region = 36  ;;  %s745_s9 = sshll.u32 (!%p1649_p7), %s1442_s10, 3 }
  0x7b   : > { %s292_s20 = scalar_lea.sflag (!%p1649_p7), [#allocation3], %s1442_s10  ;;  %s295_s12 = scalar_lea.vmem (!%p1649_p7), [#allocation2], %s745_s9 }
  0x81   : > { %1139 = dma.done.wait (%p1650_p3), %s292_s20, 128  }
  0x82   : > { %1141 = vsyncadd (%p1650_p3), %s292_s20, 4294967168  ;;  %p1651_p12 = scmp.eq.s32.totalorder %s1271_s27, 0 }
  0x84   : > { %1143 = dma.done.wait (%p1651_p12), [#allocation6], 32   ;;  %p1652_p11 = pmov %p1651_p12 }
  0x86   : > { %1145 = vsyncadd (%p1652_p11), [#allocation6], 4294967264  ;;  %p1653_p2 = pmov %p1652_p11 }
  0x88   : > { %1147 = dma.done.wait (%p1653_p2), [#allocation9], 256   ;;  %p1654_p4 = pmov %p1653_p2 }
  0x89   : > { %vm350_vm0 = vcmask 261120   ;;  %v347_v0 = vld [vmem:[%s295_s12] sm:$0xff]  ;;  %v912_v7 = vld [vmem:[#allocation8] sm:$0xff]   ;;  %v1188_v8 = vmov 0.0   ;;  %vm1189_vm1 = vmmov 0   ;;  %s1462_s29 = sshll.u32 %s1442_s10, 4 }
  0x8a   : > { %1149 = vsyncadd (%p1654_p4), [#allocation9], 4294967040  ;;  %v351_v1 = vsel %vm350_vm0, %v347_v0, 0.0  ;;  %785 = vmatprep.subr.bf16.mxu0 %v1188_v8  ;;  %789 = vmatprep.mubr.msk.bf16.mxu0 %vm1189_vm1, %v1188_v8  ;;  %v913_v9 = vld [vmem:[#allocation8 + $0x8] sm:$0xff]   ;;  %v752_v14 = vld [vmem:[#allocation5] ss:$0 sm:$0xff] }
  0x8b   : > { %352 = vadd.xlane.f32.xlu0 %v351_v1  ;;  %786 = vmatpush3.bf16.msra.mxu0 %v912_v7  ;;  %v753_v16 = vld [vmem:[#allocation7] ss:$0 sm:$0xff]  ;;  %vm440_vm2 = vcmask 60416   ;;  %s1190_s7 = smov 80   ;;  %s1191_s28 = smov 96  }
  0x8c   : > { %787 = vmatprep.subr.bf16.mxu0 %v1188_v8  ;;  %s1465_s16 = scalar_lea.vmem [#allocation10], %s1462_s29  ;;  %s1192_s18 = smov 104  }
  0x8d   : > { %s1193_s17 = smov 88   ;;  %s1194_s14 = smov 72  }
  0x8e   : > { %s1637_s13 = smov 64   ;;  %s1196_s11 = smov 120  }
  0x8f   : > { %788 = vmatpush3.bf16.msra.mxu0 %v913_v9  ;;  %s1197_s9 = smov 56   ;;  %s1198_s20 = smov 112  }
  0x90   : > { %s1199_s12 = smov 48  }
 0x118   : > { %v353_v2 = vpop.xlane.xlu0 %352 }
 0x119   : > { %v355_v3 = vmul.f32 0.03125, %v353_v2 }
 0x11b   : > { %v356_v4 = vsub.f32 %v347_v0, %v355_v3 }
 0x11d   : > { %v357_v5 = vmul.f32 %v356_v4, %v356_v4 }
 0x11f   : > { %v358_v6 = vsel %vm350_vm0, %v357_v5, 0.0 }
 0x120   : > { %359 = vadd.xlane.f32.xlu0 %v358_v6 }
 0x1ad   : > { %v360_v10 = vpop.xlane.xlu0 %359 }
 0x1ae   : > { %v361_v11 = vmul.f32 0.03125, %v360_v10 }
 0x1b0   : > { %v362_v12 = vadd.f32 1e-05, %v361_v11 }
 0x1b2   : > { %914 = vrsqrt.f32 %v362_v12 }
 0x1bc   : > { %v915_v13 = vpop.eup %914 }
 0x1bd   : > { %v364_v15 = vmul.f32 %v915_v13, %v356_v4 }
 0x1bf   : > { %v371_v17 = vmul.f32 %v752_v14, %v364_v15 }
 0x1c1   : > { %v378_v18 = vadd.f32 %v753_v16, %v371_v17 }
 0x1c3   : > { %v379_v19 = vpack.c.bf16 %v378_v18, %v378_v18 }
 0x1c5   : > { %790 = vmatmul.mubr.msk.bf16.vlgmr.msra.gmra.mrb[0].mxu0 %vm350_vm0, %v379_v19 }
 0x298   : > { %v433_v20 = vpop.f32.mrb[0].mxu0 }
 0x299   : > { %v439_v21 = vpack.c.bf16 %v433_v20, %v433_v20  ;;  %v791_v22 = vpop.f32.mrb[1].mxu0 }
 0x29a   : > { %v436_v23 = vpop.f32.mrb[2].mxu0 }
 0x29b   : > { %473 = vrot.lane.b32.xlu0 %v439_v21, %s1190_s7  ;;  %445 = vrot.lane.b32.xlu1 %v439_v21, %s1191_s28  ;;  %v792_v24 = vpop.f32.mrb[3].mxu0  ;;  %441 = vst.msk [vmem:[%s1465_s16] sm:$0xf] %vm440_vm2, %v439_v21  ;;  %s1200_s7 = smov 40   ;;  %s338_s28 = scalar_lea.vmem [#allocation11], %s1462_s29 }
 0x29f   : > { %483 = vrot.lane.b32.xlu0 %v439_v21, %s1192_s18  ;;  %458 = vrot.lane.b32.xlu1 %v439_v21, %s1193_s17  ;;  %s540_s18 = sshll.u32 %s338_s28, 4  ;;  %s503_s17 = sand.u32 1, %s1271_s27   ;;  %s1480_s18 = int_to_ptr.vmem [resolvable:$true] %s540_s18 }
 0x2a0   : > { %s1030_s27 = scalar_lea.vmem %s1480_s18, 256 }
 0x2a1   : > { %p1031_p6 = scmp.ne.s32.totalorder %s1480_s18, %s1030_s27 }
 0x2a3   : > { %488 = vrot.lane.b32.xlu1 %v439_v21, %s1194_s14  ;;  %s1475_s14 = sshll.u32 %s1172_s24, 8  ;;  %s1489_s24 = scalar_lea.sflag [#allocation12], %s503_s17 }
 0x2a4   : > { %p1032_p8 = pnand %p1031_p6, %p1387_p1 }
 0x2a6   : > { %p1033_p0 = pneg %p1032_p8 }
 0x2a7   : > { %449 = vrot.lane.b32.xlu1 %v439_v21, %s1637_s13 }
 0x2ab   : > { %453 = vrot.lane.b32.xlu1 %v439_v21, %s1196_s11 }
 0x2af   : > { %463 = vrot.lane.b32.xlu1 %v439_v21, %s1197_s9 }
 0x2b3   : > { %468 = vrot.lane.b32.xlu1 %v439_v21, %s1198_s20  ;;  %s1486_s20 = scalar_lea.hbm %s1631_s5, %s1475_s14 }
 0x2b7   : > { %478 = vrot.lane.b32.xlu1 %v439_v21, %s1199_s12  ;;  %s1201_s12 = smov [#allocation11]  }
 0x2bb   : > { %493 = vrot.lane.b32.xlu1 %v439_v21, %s1200_s7  ;;  %s1034_s7 = sshll.u32 %s1201_s12, 4  ;;  %s1035_s7 = int_to_ptr.vmem [resolvable:$false] %s1034_s7 }
 0x2bc   : > { %s1036_s13 = scalar_lea.vmem %s1035_s7, 512  ;;  %p1037_p5 = scmp.lt.s32.totalorder %s1480_s18, %s1035_s7 }
 0x2bd   : > { %p1038_p10 = scmp.lt.s32.totalorder %s1036_s13, %s1030_s27 }
 0x2bf   : > { %p1039_p13 = por %p1038_p10, %p1037_p5 }
 0x2c1   : > { %p1040_p9 = pnand %p1039_p13, %p1033_p0 }
 0x30d   : > { %v474_v25 = vpop.permute.xlu0 %473  ;;  %v446_v26 = vpop.permute.xlu1 %445 }
 0x30e   : > { %762 = vst.msk [vmem:[%s338_s28 + $0x8] sm:$0xf] %vm440_vm2, %v474_v25  ;;  %448 = vst.msk [vmem:[%s338_s28] sm:$0xf] %vm440_vm2, %v446_v26 }
 0x311   : > { %v484_v27 = vpop.permute.xlu0 %483  ;;  %v459_v28 = vpop.permute.xlu1 %458 }
 0x312   : > { %764 = vst.msk [vmem:[%s1465_s16 + $0xc] sm:$0xf] %vm440_vm2, %v484_v27  ;;  %759 = vst.msk [vmem:[%s338_s28 + $0x4] sm:$0xf] %vm440_vm2, %v459_v28 }
 0x315   : > { %v489_v29 = vpop.permute.xlu1 %488 }
 0x316   : > { %765 = vst.msk [vmem:[%s338_s28 + $0xc] sm:$0xf] %vm440_vm2, %v489_v29 }
 0x317   : > { %1043 = shalt.err (!%p1040_p9)
}
 0x318   : > { %s1044_s28 = scalar_lea.hbm %s1486_s20, 256  ;;  %s1048_s9 = scalar_lea.hbm %s1631_s5, 512 }
 0x319   : > { %p1045_p7 = scmp.ne.s32.totalorder %s1486_s20, %s1044_s28  ;;  %p1049_p11 = scmp.lt.u32.totalorder %s1486_s20, %s1631_s5 }
 0x31a   : > { %p1050_p2 = scmp.lt.u32.totalorder %s1048_s9, %s1044_s28  ;;  %p1052_p6 = scmp.lt.u32.totalorder %s1044_s28, %s1486_s20 }
 0x31b   : > { %p1046_p3 = pnand %p1045_p7, %p1387_p1 }
 0x31c   : > { %p1051_p4 = por %p1050_p2, %p1049_p11 }
 0x31d   : > { %p1047_p12 = pneg %p1046_p3 }
 0x31e   : > { %p1053_p8 = por %p1052_p6, %p1051_p4 }
 0x320   : > { %p1054_p0 = pnand %p1053_p8, %p1047_p12 }
 0x322   : > { %1057 = shalt.err (!%p1054_p0)
}
 0x323   : > { %s1639_s13 = smov 4   ;;  %s1655_s27 = smov 64   ;;  %v450_v30 = vpop.permute.xlu1 %449 }
 0x324   : > { %808 = dma.vmem_to_hbm [thread:$0]  (%p1387_p1), %s1480_s18, 256, %s1486_s20, %s1489_s24, %s1655_s27, %s1655_s27, %s1639_s13  }
 0x325   : > { %s1517_s28 = scalar_lea.vmem [#allocation13], %s1462_s29  ;;  %s523_s17 = sshll.u32 %s1465_s16, 4  ;;  %s1526_s17 = int_to_ptr.vmem [resolvable:$true] %s523_s17 }
 0x326   : > { %452 = vst.msk [vmem:[%s1517_s28] sm:$0xf] %vm440_vm2, %v450_v30  ;;  %s1532_s29 = scalar_lea.hbm %s1630_s4, %s1475_s14  ;;  %s1058_s20 = scalar_lea.vmem %s1526_s17, 256 }
 0x327   : > { %v454_v31 = vpop.permute.xlu1 %453  ;;  %p1059_p5 = scmp.ne.s32.totalorder %s1526_s17, %s1058_s20  ;;  %s1203_s12 = smov [#allocation10]  }
 0x328   : > { %758 = vst.msk [vmem:[%s1465_s16 + $0x4] sm:$0xf] %vm440_vm2, %v454_v31  ;;  %s1062_s7 = sshll.u32 %s1203_s12, 4  ;;  %s1063_s7 = int_to_ptr.vmem [resolvable:$false] %s1062_s7 }
 0x329   : > { %p1060_p10 = pnand %p1059_p5, %p1387_p1  ;;  %s1064_s13 = scalar_lea.vmem %s1063_s7, 512 }
 0x32a   : > { %p1065_p9 = scmp.lt.s32.totalorder %s1526_s17, %s1063_s7  ;;  %p1066_p7 = scmp.lt.s32.totalorder %s1064_s13, %s1058_s20 }
 0x32b   : > { %v464_v32 = vpop.permute.xlu1 %463  ;;  %p1061_p13 = pneg %p1060_p10 }
 0x32c   : > { %760 = vst.msk [vmem:[%s1517_s28 + $0x4] sm:$0xf] %vm440_vm2, %v464_v32  ;;  %p1067_p3 = por %p1066_p7, %p1065_p9 }
 0x32e   : > { %p1068_p12 = pnand %p1067_p3, %p1061_p13 }
 0x32f   : > { %v469_v33 = vpop.permute.xlu1 %468 }
 0x330   : > { %761 = vst.msk [vmem:[%s1465_s16 + $0x8] sm:$0xf] %vm440_vm2, %v469_v33 }
 0x331   : > { %1071 = shalt.err (!%p1068_p12)
}
 0x332   : > { %s1072_s16 = scalar_lea.hbm %s1532_s29, 256  ;;  %s1076_s12 = scalar_lea.hbm %s1630_s4, 512 }
 0x333   : > { %p1073_p11 = scmp.ne.s32.totalorder %s1532_s29, %s1072_s16  ;;  %p1077_p6 = scmp.lt.u32.totalorder %s1532_s29, %s1630_s4 }
 0x334   : > { %p1078_p8 = scmp.lt.u32.totalorder %s1076_s12, %s1072_s16  ;;  %p1080_p5 = scmp.lt.u32.totalorder %s1072_s16, %s1532_s29 }
 0x335   : > { %p1074_p2 = pnand %p1073_p11, %p1387_p1 }
 0x336   : > { %p1079_p0 = por %p1078_p8, %p1077_p6 }
 0x337   : > { %p1075_p4 = pneg %p1074_p2 }
 0x338   : > { %p1081_p10 = por %p1080_p5, %p1079_p0 }
 0x33a   : > { %p1082_p13 = pnand %p1081_p10, %p1075_p4 }
 0x33c   : > { %1085 = shalt.err (!%p1082_p13)
}
 0x33d   : > { %s1656_s13 = smov 4   ;;  %s1657_s20 = scalar_lea.sflag [#allocation4], %s1442_s10  ;;  %v479_v34 = vpop.permute.xlu1 %478 }
 0x33e   : > { %807 = dma.vmem_to_hbm [thread:$0]  (%p1387_p1), %s1526_s17, 256, %s1532_s29, %s1657_s20, %s1655_s27, %s1655_s27, %s1656_s13  }
 0x33f   : > { %s557_s18 = sshll.u32 %s1517_s28, 4  ;;  %763 = vst.msk [vmem:[%s1517_s28 + $0x8] sm:$0xf] %vm440_vm2, %v479_v34  ;;  %s1572_s10 = scalar_lea.hbm %s1632_s6, %s1475_s14  ;;  %s1566_s18 = int_to_ptr.vmem [resolvable:$true] %s557_s18 }
 0x340   : > { %s1086_s9 = scalar_lea.vmem %s1566_s18, 256  ;;  %s1204_s17 = smov [#allocation13]  }
 0x341   : > { %v494_v35 = vpop.permute.xlu1 %493  ;;  %p1087_p9 = scmp.ne.s32.totalorder %s1566_s18, %s1086_s9  ;;  %s1090_s29 = sshll.u32 %s1204_s17, 4  ;;  %s1091_s29 = int_to_ptr.vmem [resolvable:$false] %s1090_s29 }
 0x342   : > { %766 = vst.msk [vmem:[%s1517_s28 + $0xc] sm:$0xf] %vm440_vm2, %v494_v35  ;;  %s1092_s12 = scalar_lea.vmem %s1091_s29, 512  ;;  %p1093_p12 = scmp.lt.s32.totalorder %s1566_s18, %s1091_s29 }
 0x343   : > { %p1088_p7 = pnand %p1087_p9, %p1387_p1  ;;  %p1094_p11 = scmp.lt.s32.totalorder %s1092_s12, %s1086_s9 }
 0x345   : > { %p1089_p3 = pneg %p1088_p7  ;;  %p1095_p2 = por %p1094_p11, %p1093_p12 }
 0x347   : > { %p1096_p4 = pnand %p1095_p2, %p1089_p3 }
 0x349   : > { %1099 = shalt.err (!%p1096_p4)
}
 0x34a   : > { %s1100_s14 = scalar_lea.hbm %s1572_s10, 256  ;;  %s1104_s20 = scalar_lea.hbm %s1632_s6, 512 }
 0x34b   : > { %p1101_p6 = scmp.ne.s32.totalorder %s1572_s10, %s1100_s14  ;;  %p1105_p5 = scmp.lt.u32.totalorder %s1572_s10, %s1632_s6 }
 0x34c   : > { %p1106_p10 = scmp.lt.u32.totalorder %s1104_s20, %s1100_s14  ;;  %p1108_p9 = scmp.lt.u32.totalorder %s1100_s14, %s1572_s10 }
 0x34d   : > { %p1102_p8 = pnand %p1101_p6, %p1387_p1 }
 0x34e   : > { %p1107_p13 = por %p1106_p10, %p1105_p5 }
 0x34f   : > { %p1103_p0 = pneg %p1102_p8 }
 0x350   : > { %p1109_p7 = por %p1108_p9, %p1107_p13 }
 0x352   : > { %p1110_p3 = pnand %p1109_p7, %p1103_p0 }
 0x354   : > { %1113 = shalt.err (!%p1110_p3)
}
 0x355   : > { %809 = dma.vmem_to_hbm [thread:$0]  (%p1387_p1), %s1566_s18, 256, %s1572_s10, %s1489_s24, %s1655_s27, %s1655_s27, %s1656_s13  }
 0x356 PF: > { %s572_s9 = sand.u32 1, %s1160_s21   ;;  %p1658_p12 = scmp.ne.s32.totalorder %s1642_s30, 0 }
 0x357   : > { %p1659_p11 = scmp.ge.s32.totalorder %s1180_s26, 2  ;;  %s573_s17 = scalar_lea.sflag [#allocation4], %s572_s9 }
 0x359   : > { %p828_p2 = pnand %p1659_p11, %p1658_p12 }
 0x35b   : > { %1151 = dma.done.wait (!%p828_p2), %s573_s17, 256  }
 0x35c   : > { %1153 = vsyncadd (!%p828_p2), %s573_s17, 4294967040  ;;  %s1660_s8 = sadd.s32 4294967294, %s1180_s26  }
 0x35d   : > { %s581_s29 = sand.u32 1, %s1660_s8  }
 0x35e   : > { %s582_s12 = scalar_lea.sflag [#allocation12], %s581_s29 }
 0x35f   : > { %1155 = dma.done.wait (!%p828_p2), %s582_s12, 512  }
 0x360   : > { %1157 = vsyncadd (!%p828_p2), %s582_s12, 4294966784  ;;  %s28_s26 = sadd.s32 1, %s1180_s26   ;;  %s1661_s21 = smov %s1164_s22 }
 0x361   : > { %p25_p1 = scmp.ge.s32.totalorder %s28_s26, 4   ;;  %s1662_s22 = smov %s1168_s23 }
 0x362   : > { %s1663_s23 = smov %s1399_s15  ;;  %s1664_s24 = smov %s1176_s25 }
 0x363   : > { %s1665_s25 = smov %s1667_s19  ;;  %27 = sbr.rel (!%p25_p1) target bundleno = 10 (0xa), region = 134 }
 0x36a   :  { %596 = vsyncpa [#allocation3], 1 }
 0x36b   :  { %598 = vsyncpa [#allocation3 + $0x1], 1 }
 0x36c   :  { %599 = vsyncpa [#allocation6], 1 }
 0x36d   :  { %600 = vsyncpa [#allocation9], 1 }
 0x36e   :  { %601 = vsyncpa [#allocation4], 1 }
 0x36f   :  { %603 = vsyncpa [#allocation4 + $0x1], 1 }
 0x370   :  { %604 = vsyncpa [#allocation12], 1 }
 0x371   :  { %606 = vsyncpa [#allocation12 + $0x1], 1 }

</bundles_post_ra>
